<compile_context>
chip_gen: v7x
topology: tpu7x:2x2x1
jax: 0.10.0
libtpu: 0.0.40
codegen_flags: <defaults>
</compile_context>

<pallas_src>
import functools

import jax
import jax.numpy as jnp
from jax.experimental import pallas as pl
from jax.experimental.pallas import tpu as pltpu


# ----------------------------------------------------------------------------
# BlockSpec helpers
# ----------------------------------------------------------------------------
def _batch_spec(a):
    """Block = one batch element, full remaining dims (last two dims == full)."""
    nd = a.ndim
    return pl.BlockSpec((1,) + tuple(a.shape[1:]),
                        lambda b, _nd=nd: (b,) + (0,) * (_nd - 1))


def _whole_spec(a):
    """Whole-array block (weights, shared across the grid)."""
    nd = a.ndim
    return pl.BlockSpec(tuple(a.shape), lambda b, _nd=nd: (0,) * nd)


# ----------------------------------------------------------------------------
# The fused GenCore kernel
# ----------------------------------------------------------------------------
def _gencore_kernel(v_ref, r_ref, z_ref, h_ref, c_ref, u_ref,
                    wv_ref, wr_ref, wc_ref, bc_ref, wh_ref,
                    h_out_ref, c_out_ref, u_out_ref,
                    xp_ref, patch_ref,
                    *, H, W, ksize, hc, cin, r_upsample):
    HW = H * W
    pad = (ksize - 1) // 2
    v_ch = wv_ref.shape[0]
    r_ch = wr_ref.shape[0]
    z_ch = z_ref.shape[-1]

    # ---- upsample_v: ConvTranspose(kernel=stride=h_size) on a 1x1 input -----
    # out[p, d] = sum_c v[c] * Wv[c, p, d]   (tiny: unrolled VPU mul-adds)
    v_row = v_ref[0]                                   # (1, v_ch)
    v_up = v_row[:, 0:1] * wv_ref[0]                   # (HW, v_ch)
    for c in range(1, v_ch):
        v_up = v_up + v_row[:, c:c + 1] * wv_ref[c]

    # ---- upsample_r (static branch, mirrors the torch `if`) -----------------
    if r_upsample:
        r_row = r_ref[0]                               # (1, r_ch)
        r_up = r_row[:, 0:1] * wr_ref[0]               # (HW, r_ch)
        for c in range(1, r_ch):
            r_up = r_up + r_row[:, c:c + 1] * wr_ref[c]
    else:
        r_up = r_ref[0]                                # (HW, r_ch)

    # ---- ConvLSTM input: channel order (hidden, v, r, z); zero "same" pad ---
    xp_ref[...] = jnp.zeros(xp_ref.shape, xp_ref.dtype)
    h_in = h_ref[0]                                    # (HW, hc)
    xp_ref[pad:pad + H, pad:pad + W, 0:hc] = h_in.reshape(H, W, hc)
    xp_ref[pad:pad + H, pad:pad + W, hc:hc + v_ch] = v_up.reshape(H, W, v_ch)
    xp_ref[pad:pad + H, pad:pad + W,
           hc + v_ch:hc + v_ch + r_ch] = r_up.reshape(H, W, r_ch)
    xp_ref[pad:pad + H, pad:pad + W,
           hc + v_ch + r_ch:cin] = z_ref[0].reshape(H, W, z_ch)

    # ---- im2col patch matrix; contraction zero-padded to a 128 multiple -----
    patch_ref[...] = jnp.zeros(patch_ref.shape, patch_ref.dtype)
    for ki in range(ksize):
        for kj in range(ksize):
            t0 = (ki * ksize + kj) * cin
            patch_ref[:, t0:t0 + cin] = (
                xp_ref[ki:ki + H, kj:kj + W, :].reshape(HW, cin))

    # ---- one MXU matmul for the whole 5x5 conv + bias ------------------------
    acc = jnp.dot(patch_ref[...], wc_ref[...],
                  preferred_element_type=jnp.float32)
    acc = acc + bc_ref[...]                            # (HW, 4*hc)

    # ---- gates: transcendentals on the full slab, slice only for the combine
    sg = jax.nn.sigmoid(acc)                           # one full-width EUP pass
    g = jnp.tanh(acc[:, 3 * hc:4 * hc])
    i_g = sg[:, 0 * hc:1 * hc]
    f_g = sg[:, 1 * hc:2 * hc]
    o_g = sg[:, 2 * hc:3 * hc]

    c_new = f_g * c_ref[0] + i_g * g
    h_new = o_g * jnp.tanh(c_new)

    h_out_ref[0] = h_new.astype(h_out_ref.dtype)
    c_out_ref[0] = c_new.astype(c_out_ref.dtype)

    # ---- upsample_h (kernel=stride=s conv-transpose == matmul) + residual u -
    # output last dim = s*s*hc (128 here) -> lane-dense stores
    u_out_ref[0] = (jnp.dot(h_new, wh_ref[...],
                            preferred_element_type=jnp.float32)
                    + u_ref[0]).astype(u_out_ref.dtype)


# ----------------------------------------------------------------------------
# Parameters (deterministic, matches the nn.Module shapes)
# ----------------------------------------------------------------------------
def init_gencore_params(key, z_ch, v_ch, r_ch, h_ch, image_size, r_scale):
    h_size = image_size // r_scale
    cin = z_ch + v_ch + r_ch + h_ch
    k1, k2, k3, k4, k5 = jax.random.split(key, 5)
    scale = 0.1
    return dict(
        # ConvTranspose2d weights: (in_ch, out_ch, kH, kW)
        w_v=jax.random.normal(k1, (v_ch, v_ch, h_size, h_size), jnp.float32) * scale,
        w_r=jax.random.normal(k2, (r_ch, r_ch, h_size, h_size), jnp.float32) * scale,
        w_h=jax.random.normal(k3, (h_ch, h_ch, r_scale, r_scale), jnp.float32) * scale,
        # Conv2d weight: (out_ch, in_ch, kH, kW), plus bias
        w_c=jax.random.normal(k4, (4 * h_ch, cin, 5, 5), jnp.float32) * scale,
        b_c=jax.random.normal(k5, (4 * h_ch,), jnp.float32) * scale,
    )


def prepare_gencore_weights(params, *, h_size, r_scale):
    """One-time weight re-layouts (hoisted out of the per-step forward)."""
    w_v, w_r, w_h = params['w_v'], params['w_r'], params['w_h']
    w_c, b_c = params['w_c'], params['b_c']
    v_ch, r_ch, h_ch = w_v.shape[0], w_r.shape[0], w_h.shape[0]
    cout, cin, k = w_c.shape[0], w_c.shape[1], w_c.shape[2]
    HW = h_size * h_size

    # broadcast conv-transpose (1x1 input): W[c, p, d]
    wv3 = jnp.transpose(w_v, (0, 2, 3, 1)).reshape(v_ch, HW, v_ch)
    wr3 = jnp.transpose(w_r, (0, 2, 3, 1)).reshape(r_ch, HW, r_ch)
    # pixel-shuffle conv-transpose (kernel=stride=r_scale): W[c, (p*s+q)*h_ch+d]
    wh2 = jnp.transpose(w_h, (0, 2, 3, 1)).reshape(h_ch, r_scale * r_scale * h_ch)
    # 5x5 conv as im2col matmul; pad the contraction dim to a multiple of 128
    wc2 = jnp.transpose(w_c, (2, 3, 1, 0)).reshape(k * k * cin, cout)
    kpad = (-(k * k * cin)) % 128
    if kpad:
        wc2 = jnp.concatenate([wc2, jnp.zeros((kpad, cout), wc2.dtype)], axis=0)
    bc2 = b_c.reshape(1, cout).astype(jnp.float32)
    return dict(wv=wv3, wr=wr3, wh=wh2, wc=wc2, bc=bc2)


# ----------------------------------------------------------------------------
# GenCore forward (NCHW in / NCHW out)
# ----------------------------------------------------------------------------
def gen_core_forward(prepped, c_g, h_g, z, v, r, u, *,
                     v_ch, h_size, r_scale, ksize=5):
    B, h_ch = c_g.shape[0], c_g.shape[1]
    H = W = h_size
    HW = H * W
    s = r_scale
    z_ch = z.shape[1]
    r_ch = r.shape[1]
    cin = h_ch + v_ch + r_ch + z_ch
    pad = (ksize - 1) // 2

    # NCHW -> lane-dense, spatially-flattened channels-last views (plumbing only)
    z_flat = jnp.transpose(z, (0, 2, 3, 1)).reshape(B, HW, z_ch)
    h_flat = jnp.transpose(h_g, (0, 2, 3, 1)).reshape(B, HW, h_ch)
    c_flat = jnp.transpose(c_g, (0, 2, 3, 1)).reshape(B, HW, h_ch)
    v3 = v.reshape(B, 1, v_ch)

    r_upsample = (r.shape[2] != h_size)        # static, like the torch `if`
    if r_upsample:
        r_arg = r.reshape(B, 1, r_ch)
    else:
        r_arg = jnp.transpose(r, (0, 2, 3, 1)).reshape(B, HW, r_ch)

    # pixel-shuffle u to (B, HW, s*s*h_ch): last dim is 128 here (lane-dense)
    u_flat = (jnp.transpose(u, (0, 2, 3, 1))
              .reshape(B, H, s, W, s, h_ch)
              .transpose(0, 1, 3, 2, 4, 5)
              .reshape(B, HW, s * s * h_ch))

    args = (v3, r_arg, z_flat, h_flat, c_flat, u_flat,
            prepped['wv'], prepped['wr'], prepped['wc'],
            prepped['bc'], prepped['wh'])
    in_specs = [_batch_spec(v3), _batch_spec(r_arg), _batch_spec(z_flat),
                _batch_spec(h_flat), _batch_spec(c_flat), _batch_spec(u_flat),
                _whole_spec(prepped['wv']), _whole_spec(prepped['wr']),
                _whole_spec(prepped['wc']), _whole_spec(prepped['bc']),
                _whole_spec(prepped['wh'])]
    out_shape = (jax.ShapeDtypeStruct((B, HW, h_ch), jnp.float32),
                 jax.ShapeDtypeStruct((B, HW, h_ch), jnp.float32),
                 jax.ShapeDtypeStruct((B, HW, s * s * h_ch), jnp.float32))
    out_specs = (pl.BlockSpec((1, HW, h_ch), lambda b: (b, 0, 0)),
                 pl.BlockSpec((1, HW, h_ch), lambda b: (b, 0, 0)),
                 pl.BlockSpec((1, HW, s * s * h_ch), lambda b: (b, 0, 0)))

    kern = functools.partial(_gencore_kernel, H=H, W=W, ksize=ksize, hc=h_ch,
                             cin=cin, r_upsample=r_upsample)
    h_new, c_new, u_new = pl.pallas_call(
        kern,
        grid=(B,),
        out_shape=out_shape,
        in_specs=in_specs,
        out_specs=out_specs,
        scratch_shapes=[
            pltpu.VMEM((H + 2 * pad, W + 2 * pad, cin), jnp.float32),  # padded x
            pltpu.VMEM((HW, prepped['wc'].shape[0]), jnp.float32),     # im2col
        ],
        input_output_aliases={5: 2},   # u_flat buffer is updated in place
        compiler_params=pltpu.CompilerParams(
            dimension_semantics=("parallel",),        # megacore on v7x
            vmem_limit_bytes=32 * 1024 * 1024),       # covers v5e's 16 MiB default
    )(*args)

    # back to NCHW (PyTorch convention)
    h_out = h_new.reshape(B, H, W, h_ch).transpose(0, 3, 1, 2)
    c_out = c_new.reshape(B, H, W, h_ch).transpose(0, 3, 1, 2)
    u_out = (u_new.reshape(B, H, W, s, s, h_ch)
             .transpose(0, 5, 1, 3, 2, 4)
             .reshape(B, h_ch, H * s, W * s))
    return h_out, c_out, u_out


# ----------------------------------------------------------------------------
# Pure-JAX reference of the PyTorch semantics (NCHW) for a correctness check
# ----------------------------------------------------------------------------
def gen_core_reference(params, c_g, h_g, z, v, r, u, *, v_ch, h_size, r_scale):
    B = c_g.shape[0]
    h_ch = c_g.shape[1]
    v_up = jnp.einsum('bc,cdij->bdij', v.reshape(B, v_ch), params['w_v'])
    if r.shape[2] != h_size:
        r_up = jnp.einsum('bc,cdij->bdij', r.reshape(B, -1), params['w_r'])
    else:
        r_up = r
    x = jnp.concatenate([h_g, v_up, r_up, z], axis=1)
    conv = jax.lax.conv_general_dilated(
        x, params['w_c'], window_strides=(1, 1), padding=((2, 2), (2, 2)),
        dimension_numbers=('NCHW', 'OIHW', 'NCHW'))
    conv = conv + params['b_c'].reshape(1, -1, 1, 1)
    cc_i, cc_f, cc_o, cc_gt = jnp.split(conv, 4, axis=1)
    c_new = jax.nn.sigmoid(cc_f) * c_g + jax.nn.sigmoid(cc_i) * jnp.tanh(cc_gt)
    h_new = jax.nn.sigmoid(cc_o) * jnp.tanh(c_new)
    up = jnp.einsum('bcij,cdkl->bdikjl', h_new, params['w_h'])
    u_new = u + up.reshape(B, h_ch, h_size * r_scale, h_size * r_scale)
    return h_new, c_new, u_new


if __name__ == "__main__":
    B = 2
    z_ch, v_ch, r_ch, h_ch = 4, 4, 4, 8
    image_size, r_scale = 16, 4
    h_size = image_size // r_scale  # 4

    key = jax.random.PRNGKey(0)
    kp, k0, k1, k2, k3, k4, k5, k6 = jax.random.split(key, 8)
    params = init_gencore_params(kp, z_ch, v_ch, r_ch, h_ch, image_size, r_scale)
    prepped = prepare_gencore_weights(params, h_size=h_size, r_scale=r_scale)

    c_g = jax.random.normal(k0, (B, h_ch, h_size, h_size), jnp.float32)
    h_g = jax.random.normal(k1, (B, h_ch, h_size, h_size), jnp.float32)
    z = jax.random.normal(k2, (B, z_ch, h_size, h_size), jnp.float32)
    v = jax.random.normal(k3, (B, v_ch), jnp.float32)
    r_small = jax.random.normal(k4, (B, r_ch, 1, 1), jnp.float32)       # upsample_r path
    r_full = jax.random.normal(k6, (B, r_ch, h_size, h_size), jnp.float32)  # pass-through path
    u = jax.random.normal(k5, (B, h_ch, image_size, image_size), jnp.float32)

    fwd = jax.jit(functools.partial(gen_core_forward, v_ch=v_ch,
                                    h_size=h_size, r_scale=r_scale))

    for r in (r_small, r_full):
        outs = jax.block_until_ready(fwd(prepped, c_g, h_g, z, v, r, u))
        refs = gen_core_reference(params, c_g, h_g, z, v, r, u,
                                  v_ch=v_ch, h_size=h_size, r_scale=r_scale)
        for o, rf in zip(outs, refs):
            err = float(jnp.max(jnp.abs(o - rf)))
            assert jnp.allclose(o, rf, atol=1e-4, rtol=1e-4), err

    print("KERNEL_OK")
</pallas_src>

<mosaic_0001>
module attributes {stable_mosaic.version = 11 : i64} {
  func.func @_gencore_kernel(%arg0: i32, %arg1: memref<1x1x4xf32, #tpu.memory_space<vmem>>, %arg2: memref<1x1x4xf32, #tpu.memory_space<vmem>>, %arg3: memref<1x16x4xf32, #tpu.memory_space<vmem>>, %arg4: memref<1x16x8xf32, #tpu.memory_space<vmem>>, %arg5: memref<1x16x8xf32, #tpu.memory_space<vmem>>, %arg6: memref<1x16x128xf32, #tpu.memory_space<vmem>>, %arg7: memref<4x16x4xf32, #tpu.memory_space<vmem>>, %arg8: memref<4x16x4xf32, #tpu.memory_space<vmem>>, %arg9: memref<512x32xf32, #tpu.memory_space<vmem>>, %arg10: memref<1x32xf32, #tpu.memory_space<vmem>>, %arg11: memref<8x128xf32, #tpu.memory_space<vmem>>, %arg12: memref<1x16x8xf32, #tpu.memory_space<vmem>>, %arg13: memref<1x16x8xf32, #tpu.memory_space<vmem>>, %arg14: memref<1x16x128xf32, #tpu.memory_space<vmem>>, %arg15: memref<8x8x20xf32, #tpu.memory_space<vmem>>, %arg16: memref<16x512xf32, #tpu.memory_space<vmem>>) attributes {dimension_semantics = [#tpu.dimension_semantics<parallel>], iteration_bounds = array<i64: 2>, scalar_prefetch = 0 : i64, scratch_operands = 2 : i64, tpu.core_type = #tpu.core_type<tc>, window_params = [{transform_indices = @transform_0, window_bounds = array<i64: 1, 1, 4>}, {transform_indices = @transform_1, window_bounds = array<i64: 1, 1, 4>}, {transform_indices = @transform_2, window_bounds = array<i64: 1, 16, 4>}, {transform_indices = @transform_3, window_bounds = array<i64: 1, 16, 8>}, {transform_indices = @transform_4, window_bounds = array<i64: 1, 16, 8>}, {transform_indices = @transform_5, window_bounds = array<i64: 1, 16, 128>}, {pipeline_mode = #tpu.pipeline_mode<synchronous>, transform_indices = @transform_6, window_bounds = array<i64: 4, 16, 4>}, {pipeline_mode = #tpu.pipeline_mode<synchronous>, transform_indices = @transform_7, window_bounds = array<i64: 4, 16, 4>}, {pipeline_mode = #tpu.pipeline_mode<synchronous>, transform_indices = @transform_8, window_bounds = array<i64: 512, 32>}, {pipeline_mode = #tpu.pipeline_mode<synchronous>, transform_indices = @transform_9, window_bounds = array<i64: 1, 32>}, {pipeline_mode = #tpu.pipeline_mode<synchronous>, transform_indices = @transform_10, window_bounds = array<i64: 8, 128>}, {transform_indices = @transform_11, window_bounds = array<i64: 1, 16, 8>}, {transform_indices = @transform_12, window_bounds = array<i64: 1, 16, 8>}, {transform_indices = @transform_13, window_bounds = array<i64: 1, 16, 128>}]} {
    %c0 = arith.constant 0 : index
    %c0_0 = arith.constant 0 : index
    %c0_1 = arith.constant 0 : index
    %0 = vector.load %arg1[%c0, %c0_0, %c0_1] : memref<1x1x4xf32, #tpu.memory_space<vmem>>, vector<1x1x4xf32>
    %1 = vector.shape_cast %0 : vector<1x1x4xf32> to vector<1x4xf32>
    %2 = vector.extract_strided_slice %1 {offsets = [0, 0], sizes = [1, 1], strides = [1, 1]} : vector<1x4xf32> to vector<1x1xf32>
    %c0_2 = arith.constant 0 : index
    %c0_3 = arith.constant 0 : index
    %c0_4 = arith.constant 0 : index
    %3 = vector.load %arg7[%c0_2, %c0_3, %c0_4] : memref<4x16x4xf32, #tpu.memory_space<vmem>>, vector<1x16x4xf32>
    %4 = vector.shape_cast %3 : vector<1x16x4xf32> to vector<16x4xf32>
    %5 = vector.broadcast %2 : vector<1x1xf32> to vector<16x4xf32>
    %6 = arith.mulf %5, %4 : vector<16x4xf32>
    %7 = vector.extract_strided_slice %1 {offsets = [0, 1], sizes = [1, 1], strides = [1, 1]} : vector<1x4xf32> to vector<1x1xf32>
    %c1 = arith.constant 1 : index
    %c0_5 = arith.constant 0 : index
    %c0_6 = arith.constant 0 : index
    %8 = vector.load %arg7[%c1, %c0_5, %c0_6] : memref<4x16x4xf32, #tpu.memory_space<vmem>>, vector<1x16x4xf32>
    %9 = vector.shape_cast %8 : vector<1x16x4xf32> to vector<16x4xf32>
    %10 = vector.broadcast %7 : vector<1x1xf32> to vector<16x4xf32>
    %11 = arith.mulf %10, %9 : vector<16x4xf32>
    %12 = arith.addf %6, %11 : vector<16x4xf32>
    %13 = vector.extract_strided_slice %1 {offsets = [0, 2], sizes = [1, 1], strides = [1, 1]} : vector<1x4xf32> to vector<1x1xf32>
    %c2 = arith.constant 2 : index
    %c0_7 = arith.constant 0 : index
    %c0_8 = arith.constant 0 : index
    %14 = vector.load %arg7[%c2, %c0_7, %c0_8] : memref<4x16x4xf32, #tpu.memory_space<vmem>>, vector<1x16x4xf32>
    %15 = vector.shape_cast %14 : vector<1x16x4xf32> to vector<16x4xf32>
    %16 = vector.broadcast %13 : vector<1x1xf32> to vector<16x4xf32>
    %17 = arith.mulf %16, %15 : vector<16x4xf32>
    %18 = arith.addf %12, %17 : vector<16x4xf32>
    %19 = vector.extract_strided_slice %1 {offsets = [0, 3], sizes = [1, 1], strides = [1, 1]} : vector<1x4xf32> to vector<1x1xf32>
    %c3 = arith.constant 3 : index
    %c0_9 = arith.constant 0 : index
    %c0_10 = arith.constant 0 : index
    %20 = vector.load %arg7[%c3, %c0_9, %c0_10] : memref<4x16x4xf32, #tpu.memory_space<vmem>>, vector<1x16x4xf32>
    %21 = vector.shape_cast %20 : vector<1x16x4xf32> to vector<16x4xf32>
    %22 = vector.broadcast %19 : vector<1x1xf32> to vector<16x4xf32>
    %23 = arith.mulf %22, %21 : vector<16x4xf32>
    %24 = arith.addf %18, %23 : vector<16x4xf32>
    %c0_11 = arith.constant 0 : index
    %c0_12 = arith.constant 0 : index
    %c0_13 = arith.constant 0 : index
    %25 = vector.load %arg2[%c0_11, %c0_12, %c0_13] : memref<1x1x4xf32, #tpu.memory_space<vmem>>, vector<1x1x4xf32>
    %26 = vector.shape_cast %25 : vector<1x1x4xf32> to vector<1x4xf32>
    %27 = vector.extract_strided_slice %26 {offsets = [0, 0], sizes = [1, 1], strides = [1, 1]} : vector<1x4xf32> to vector<1x1xf32>
    %c0_14 = arith.constant 0 : index
    %c0_15 = arith.constant 0 : index
    %c0_16 = arith.constant 0 : index
    %28 = vector.load %arg8[%c0_14, %c0_15, %c0_16] : memref<4x16x4xf32, #tpu.memory_space<vmem>>, vector<1x16x4xf32>
    %29 = vector.shape_cast %28 : vector<1x16x4xf32> to vector<16x4xf32>
    %30 = vector.broadcast %27 : vector<1x1xf32> to vector<16x4xf32>
    %31 = arith.mulf %30, %29 : vector<16x4xf32>
    %32 = vector.extract_strided_slice %26 {offsets = [0, 1], sizes = [1, 1], strides = [1, 1]} : vector<1x4xf32> to vector<1x1xf32>
    %c1_17 = arith.constant 1 : index
    %c0_18 = arith.constant 0 : index
    %c0_19 = arith.constant 0 : index
    %33 = vector.load %arg8[%c1_17, %c0_18, %c0_19] : memref<4x16x4xf32, #tpu.memory_space<vmem>>, vector<1x16x4xf32>
    %34 = vector.shape_cast %33 : vector<1x16x4xf32> to vector<16x4xf32>
    %35 = vector.broadcast %32 : vector<1x1xf32> to vector<16x4xf32>
    %36 = arith.mulf %35, %34 : vector<16x4xf32>
    %37 = arith.addf %31, %36 : vector<16x4xf32>
    %38 = vector.extract_strided_slice %26 {offsets = [0, 2], sizes = [1, 1], strides = [1, 1]} : vector<1x4xf32> to vector<1x1xf32>
    %c2_20 = arith.constant 2 : index
    %c0_21 = arith.constant 0 : index
    %c0_22 = arith.constant 0 : index
    %39 = vector.load %arg8[%c2_20, %c0_21, %c0_22] : memref<4x16x4xf32, #tpu.memory_space<vmem>>, vector<1x16x4xf32>
    %40 = vector.shape_cast %39 : vector<1x16x4xf32> to vector<16x4xf32>
    %41 = vector.broadcast %38 : vector<1x1xf32> to vector<16x4xf32>
    %42 = arith.mulf %41, %40 : vector<16x4xf32>
    %43 = arith.addf %37, %42 : vector<16x4xf32>
    %44 = vector.extract_strided_slice %26 {offsets = [0, 3], sizes = [1, 1], strides = [1, 1]} : vector<1x4xf32> to vector<1x1xf32>
    %c3_23 = arith.constant 3 : index
    %c0_24 = arith.constant 0 : index
    %c0_25 = arith.constant 0 : index
    %45 = vector.load %arg8[%c3_23, %c0_24, %c0_25] : memref<4x16x4xf32, #tpu.memory_space<vmem>>, vector<1x16x4xf32>
    %46 = vector.shape_cast %45 : vector<1x16x4xf32> to vector<16x4xf32>
    %47 = vector.broadcast %44 : vector<1x1xf32> to vector<16x4xf32>
    %48 = arith.mulf %47, %46 : vector<16x4xf32>
    %49 = arith.addf %43, %48 : vector<16x4xf32>
    %cst = arith.constant 0.000000e+00 : f32
    %50 = vector.broadcast %cst : f32 to vector<8x8x20xf32>
    %c0_26 = arith.constant 0 : index
    %c0_27 = arith.constant 0 : index
    %c0_28 = arith.constant 0 : index
    %51 = vector.load %arg15[%c0_26, %c0_27, %c0_28] : memref<8x8x20xf32, #tpu.memory_space<vmem>>, vector<8x8x20xf32>
    tpu.vector_store %arg15[%c0_26, %c0_27, %c0_28], %50 {strides = array<i32>} : memref<8x8x20xf32, #tpu.memory_space<vmem>>, vector<8x8x20xf32>,
    %c0_29 = arith.constant 0 : index
    %c0_30 = arith.constant 0 : index
    %c0_31 = arith.constant 0 : index
    %52 = vector.load %arg4[%c0_29, %c0_30, %c0_31] : memref<1x16x8xf32, #tpu.memory_space<vmem>>, vector<1x16x8xf32>
    %53 = vector.shape_cast %52 : vector<1x16x8xf32> to vector<16x8xf32>
    %54 = vector.shape_cast %53 : vector<16x8xf32> to vector<4x4x8xf32>
    %c2_32 = arith.constant 2 : index
    %c2_33 = arith.constant 2 : index
    %c0_34 = arith.constant 0 : index
    %55 = vector.load %arg15[%c2_32, %c2_33, %c0_34] : memref<8x8x20xf32, #tpu.memory_space<vmem>>, vector<4x4x8xf32>
    tpu.vector_store %arg15[%c2_32, %c2_33, %c0_34], %54 {strides = array<i32>} : memref<8x8x20xf32, #tpu.memory_space<vmem>>, vector<4x4x8xf32>,
    %56 = vector.shape_cast %24 : vector<16x4xf32> to vector<4x4x4xf32>
    %c2_35 = arith.constant 2 : index
    %c2_36 = arith.constant 2 : index
    %c8 = arith.constant 8 : index
    %57 = vector.load %arg15[%c2_35, %c2_36, %c8] : memref<8x8x20xf32, #tpu.memory_space<vmem>>, vector<4x4x4xf32>
    tpu.vector_store %arg15[%c2_35, %c2_36, %c8], %56 {strides = array<i32>} : memref<8x8x20xf32, #tpu.memory_space<vmem>>, vector<4x4x4xf32>,
    %58 = vector.shape_cast %49 : vector<16x4xf32> to vector<4x4x4xf32>
    %c2_37 = arith.constant 2 : index
    %c2_38 = arith.constant 2 : index
    %c12 = arith.constant 12 : index
    %59 = vector.load %arg15[%c2_37, %c2_38, %c12] : memref<8x8x20xf32, #tpu.memory_space<vmem>>, vector<4x4x4xf32>
    tpu.vector_store %arg15[%c2_37, %c2_38, %c12], %58 {strides = array<i32>} : memref<8x8x20xf32, #tpu.memory_space<vmem>>, vector<4x4x4xf32>,
    %c0_39 = arith.constant 0 : index
    %c0_40 = arith.constant 0 : index
    %c0_41 = arith.constant 0 : index
    %60 = vector.load %arg3[%c0_39, %c0_40, %c0_41] : memref<1x16x4xf32, #tpu.memory_space<vmem>>, vector<1x16x4xf32>
    %61 = vector.shape_cast %60 : vector<1x16x4xf32> to vector<16x4xf32>
    %62 = vector.shape_cast %61 : vector<16x4xf32> to vector<4x4x4xf32>
    %c2_42 = arith.constant 2 : index
    %c2_43 = arith.constant 2 : index
    %c16 = arith.constant 16 : index
    %63 = vector.load %arg15[%c2_42, %c2_43, %c16] : memref<8x8x20xf32, #tpu.memory_space<vmem>>, vector<4x4x4xf32>
    tpu.vector_store %arg15[%c2_42, %c2_43, %c16], %62 {strides = array<i32>} : memref<8x8x20xf32, #tpu.memory_space<vmem>>, vector<4x4x4xf32>,
    %cst_44 = arith.constant 0.000000e+00 : f32
    %64 = vector.broadcast %cst_44 : f32 to vector<16x512xf32>
    %c0_45 = arith.constant 0 : index
    %c0_46 = arith.constant 0 : index
    %65 = vector.load %arg16[%c0_45, %c0_46] : memref<16x512xf32, #tpu.memory_space<vmem>>, vector<16x512xf32>
    tpu.vector_store %arg16[%c0_45, %c0_46], %64 {strides = array<i32>} : memref<16x512xf32, #tpu.memory_space<vmem>>, vector<16x512xf32>,
    %c0_47 = arith.constant 0 : index
    %c0_48 = arith.constant 0 : index
    %c0_49 = arith.constant 0 : index
    %66 = vector.load %arg15[%c0_47, %c0_48, %c0_49] : memref<8x8x20xf32, #tpu.memory_space<vmem>>, vector<4x4x20xf32>
    %67 = vector.shape_cast %66 : vector<4x4x20xf32> to vector<16x20xf32>
    %c0_50 = arith.constant 0 : index
    %c0_51 = arith.constant 0 : index
    %68 = vector.load %arg16[%c0_50, %c0_51] : memref<16x512xf32, #tpu.memory_space<vmem>>, vector<16x20xf32>
    tpu.vector_store %arg16[%c0_50, %c0_51], %67 {strides = array<i32>} : memref<16x512xf32, #tpu.memory_space<vmem>>, vector<16x20xf32>,
    %c0_52 = arith.constant 0 : index
    %c1_53 = arith.constant 1 : index
    %c0_54 = arith.constant 0 : index
    %69 = vector.load %arg15[%c0_52, %c1_53, %c0_54] : memref<8x8x20xf32, #tpu.memory_space<vmem>>, vector<4x4x20xf32>
    %70 = vector.shape_cast %69 : vector<4x4x20xf32> to vector<16x20xf32>
    %c0_55 = arith.constant 0 : index
    %c20 = arith.constant 20 : index
    %71 = vector.load %arg16[%c0_55, %c20] : memref<16x512xf32, #tpu.memory_space<vmem>>, vector<16x20xf32>
    tpu.vector_store %arg16[%c0_55, %c20], %70 {strides = array<i32>} : memref<16x512xf32, #tpu.memory_space<vmem>>, vector<16x20xf32>,
    %c0_56 = arith.constant 0 : index
    %c2_57 = arith.constant 2 : index
    %c0_58 = arith.constant 0 : index
    %72 = vector.load %arg15[%c0_56, %c2_57, %c0_58] : memref<8x8x20xf32, #tpu.memory_space<vmem>>, vector<4x4x20xf32>
    %73 = vector.shape_cast %72 : vector<4x4x20xf32> to vector<16x20xf32>
    %c0_59 = arith.constant 0 : index
    %c40 = arith.constant 40 : index
    %74 = vector.load %arg16[%c0_59, %c40] : memref<16x512xf32, #tpu.memory_space<vmem>>, vector<16x20xf32>
    tpu.vector_store %arg16[%c0_59, %c40], %73 {strides = array<i32>} : memref<16x512xf32, #tpu.memory_space<vmem>>, vector<16x20xf32>,
    %c0_60 = arith.constant 0 : index
    %c3_61 = arith.constant 3 : index
    %c0_62 = arith.constant 0 : index
    %75 = vector.load %arg15[%c0_60, %c3_61, %c0_62] : memref<8x8x20xf32, #tpu.memory_space<vmem>>, vector<4x4x20xf32>
    %76 = vector.shape_cast %75 : vector<4x4x20xf32> to vector<16x20xf32>
    %c0_63 = arith.constant 0 : index
    %c60 = arith.constant 60 : index
    %77 = vector.load %arg16[%c0_63, %c60] : memref<16x512xf32, #tpu.memory_space<vmem>>, vector<16x20xf32>
    tpu.vector_store %arg16[%c0_63, %c60], %76 {strides = array<i32>} : memref<16x512xf32, #tpu.memory_space<vmem>>, vector<16x20xf32>,
    %c0_64 = arith.constant 0 : index
    %c4 = arith.constant 4 : index
    %c0_65 = arith.constant 0 : index
    %78 = vector.load %arg15[%c0_64, %c4, %c0_65] : memref<8x8x20xf32, #tpu.memory_space<vmem>>, vector<4x4x20xf32>
    %79 = vector.shape_cast %78 : vector<4x4x20xf32> to vector<16x20xf32>
    %c0_66 = arith.constant 0 : index
    %c80 = arith.constant 80 : index
    %80 = vector.load %arg16[%c0_66, %c80] : memref<16x512xf32, #tpu.memory_space<vmem>>, vector<16x20xf32>
    tpu.vector_store %arg16[%c0_66, %c80], %79 {strides = array<i32>} : memref<16x512xf32, #tpu.memory_space<vmem>>, vector<16x20xf32>,
    %c1_67 = arith.constant 1 : index
    %c0_68 = arith.constant 0 : index
    %c0_69 = arith.constant 0 : index
    %81 = vector.load %arg15[%c1_67, %c0_68, %c0_69] : memref<8x8x20xf32, #tpu.memory_space<vmem>>, vector<4x4x20xf32>
    %82 = vector.shape_cast %81 : vector<4x4x20xf32> to vector<16x20xf32>
    %c0_70 = arith.constant 0 : index
    %c100 = arith.constant 100 : index
    %83 = vector.load %arg16[%c0_70, %c100] : memref<16x512xf32, #tpu.memory_space<vmem>>, vector<16x20xf32>
    tpu.vector_store %arg16[%c0_70, %c100], %82 {strides = array<i32>} : memref<16x512xf32, #tpu.memory_space<vmem>>, vector<16x20xf32>,
    %c1_71 = arith.constant 1 : index
    %c1_72 = arith.constant 1 : index
    %c0_73 = arith.constant 0 : index
    %84 = vector.load %arg15[%c1_71, %c1_72, %c0_73] : memref<8x8x20xf32, #tpu.memory_space<vmem>>, vector<4x4x20xf32>
    %85 = vector.shape_cast %84 : vector<4x4x20xf32> to vector<16x20xf32>
    %c0_74 = arith.constant 0 : index
    %c120 = arith.constant 120 : index
    %86 = vector.load %arg16[%c0_74, %c120] : memref<16x512xf32, #tpu.memory_space<vmem>>, vector<16x20xf32>
    tpu.vector_store %arg16[%c0_74, %c120], %85 {strides = array<i32>} : memref<16x512xf32, #tpu.memory_space<vmem>>, vector<16x20xf32>,
    %c1_75 = arith.constant 1 : index
    %c2_76 = arith.constant 2 : index
    %c0_77 = arith.constant 0 : index
    %87 = vector.load %arg15[%c1_75, %c2_76, %c0_77] : memref<8x8x20xf32, #tpu.memory_space<vmem>>, vector<4x4x20xf32>
    %88 = vector.shape_cast %87 : vector<4x4x20xf32> to vector<16x20xf32>
    %c0_78 = arith.constant 0 : index
    %c140 = arith.constant 140 : index
    %89 = vector.load %arg16[%c0_78, %c140] : memref<16x512xf32, #tpu.memory_space<vmem>>, vector<16x20xf32>
    tpu.vector_store %arg16[%c0_78, %c140], %88 {strides = array<i32>} : memref<16x512xf32, #tpu.memory_space<vmem>>, vector<16x20xf32>,
    %c1_79 = arith.constant 1 : index
    %c3_80 = arith.constant 3 : index
    %c0_81 = arith.constant 0 : index
    %90 = vector.load %arg15[%c1_79, %c3_80, %c0_81] : memref<8x8x20xf32, #tpu.memory_space<vmem>>, vector<4x4x20xf32>
    %91 = vector.shape_cast %90 : vector<4x4x20xf32> to vector<16x20xf32>
    %c0_82 = arith.constant 0 : index
    %c160 = arith.constant 160 : index
    %92 = vector.load %arg16[%c0_82, %c160] : memref<16x512xf32, #tpu.memory_space<vmem>>, vector<16x20xf32>
    tpu.vector_store %arg16[%c0_82, %c160], %91 {strides = array<i32>} : memref<16x512xf32, #tpu.memory_space<vmem>>, vector<16x20xf32>,
    %c1_83 = arith.constant 1 : index
    %c4_84 = arith.constant 4 : index
    %c0_85 = arith.constant 0 : index
    %93 = vector.load %arg15[%c1_83, %c4_84, %c0_85] : memref<8x8x20xf32, #tpu.memory_space<vmem>>, vector<4x4x20xf32>
    %94 = vector.shape_cast %93 : vector<4x4x20xf32> to vector<16x20xf32>
    %c0_86 = arith.constant 0 : index
    %c180 = arith.constant 180 : index
    %95 = vector.load %arg16[%c0_86, %c180] : memref<16x512xf32, #tpu.memory_space<vmem>>, vector<16x20xf32>
    tpu.vector_store %arg16[%c0_86, %c180], %94 {strides = array<i32>} : memref<16x512xf32, #tpu.memory_space<vmem>>, vector<16x20xf32>,
    %c2_87 = arith.constant 2 : index
    %c0_88 = arith.constant 0 : index
    %c0_89 = arith.constant 0 : index
    %96 = vector.load %arg15[%c2_87, %c0_88, %c0_89] : memref<8x8x20xf32, #tpu.memory_space<vmem>>, vector<4x4x20xf32>
    %97 = vector.shape_cast %96 : vector<4x4x20xf32> to vector<16x20xf32>
    %c0_90 = arith.constant 0 : index
    %c200 = arith.constant 200 : index
    %98 = vector.load %arg16[%c0_90, %c200] : memref<16x512xf32, #tpu.memory_space<vmem>>, vector<16x20xf32>
    tpu.vector_store %arg16[%c0_90, %c200], %97 {strides = array<i32>} : memref<16x512xf32, #tpu.memory_space<vmem>>, vector<16x20xf32>,
    %c2_91 = arith.constant 2 : index
    %c1_92 = arith.constant 1 : index
    %c0_93 = arith.constant 0 : index
    %99 = vector.load %arg15[%c2_91, %c1_92, %c0_93] : memref<8x8x20xf32, #tpu.memory_space<vmem>>, vector<4x4x20xf32>
    %100 = vector.shape_cast %99 : vector<4x4x20xf32> to vector<16x20xf32>
    %c0_94 = arith.constant 0 : index
    %c220 = arith.constant 220 : index
    %101 = vector.load %arg16[%c0_94, %c220] : memref<16x512xf32, #tpu.memory_space<vmem>>, vector<16x20xf32>
    tpu.vector_store %arg16[%c0_94, %c220], %100 {strides = array<i32>} : memref<16x512xf32, #tpu.memory_space<vmem>>, vector<16x20xf32>,
    %c2_95 = arith.constant 2 : index
    %c2_96 = arith.constant 2 : index
    %c0_97 = arith.constant 0 : index
    %102 = vector.load %arg15[%c2_95, %c2_96, %c0_97] : memref<8x8x20xf32, #tpu.memory_space<vmem>>, vector<4x4x20xf32>
    %103 = vector.shape_cast %102 : vector<4x4x20xf32> to vector<16x20xf32>
    %c0_98 = arith.constant 0 : index
    %c240 = arith.constant 240 : index
    %104 = vector.load %arg16[%c0_98, %c240] : memref<16x512xf32, #tpu.memory_space<vmem>>, vector<16x20xf32>
    tpu.vector_store %arg16[%c0_98, %c240], %103 {strides = array<i32>} : memref<16x512xf32, #tpu.memory_space<vmem>>, vector<16x20xf32>,
    %c2_99 = arith.constant 2 : index
    %c3_100 = arith.constant 3 : index
    %c0_101 = arith.constant 0 : index
    %105 = vector.load %arg15[%c2_99, %c3_100, %c0_101] : memref<8x8x20xf32, #tpu.memory_space<vmem>>, vector<4x4x20xf32>
    %106 = vector.shape_cast %105 : vector<4x4x20xf32> to vector<16x20xf32>
    %c0_102 = arith.constant 0 : index
    %c260 = arith.constant 260 : index
    %107 = vector.load %arg16[%c0_102, %c260] : memref<16x512xf32, #tpu.memory_space<vmem>>, vector<16x20xf32>
    tpu.vector_store %arg16[%c0_102, %c260], %106 {strides = array<i32>} : memref<16x512xf32, #tpu.memory_space<vmem>>, vector<16x20xf32>,
    %c2_103 = arith.constant 2 : index
    %c4_104 = arith.constant 4 : index
    %c0_105 = arith.constant 0 : index
    %108 = vector.load %arg15[%c2_103, %c4_104, %c0_105] : memref<8x8x20xf32, #tpu.memory_space<vmem>>, vector<4x4x20xf32>
    %109 = vector.shape_cast %108 : vector<4x4x20xf32> to vector<16x20xf32>
    %c0_106 = arith.constant 0 : index
    %c280 = arith.constant 280 : index
    %110 = vector.load %arg16[%c0_106, %c280] : memref<16x512xf32, #tpu.memory_space<vmem>>, vector<16x20xf32>
    tpu.vector_store %arg16[%c0_106, %c280], %109 {strides = array<i32>} : memref<16x512xf32, #tpu.memory_space<vmem>>, vector<16x20xf32>,
    %c3_107 = arith.constant 3 : index
    %c0_108 = arith.constant 0 : index
    %c0_109 = arith.constant 0 : index
    %111 = vector.load %arg15[%c3_107, %c0_108, %c0_109] : memref<8x8x20xf32, #tpu.memory_space<vmem>>, vector<4x4x20xf32>
    %112 = vector.shape_cast %111 : vector<4x4x20xf32> to vector<16x20xf32>
    %c0_110 = arith.constant 0 : index
    %c300 = arith.constant 300 : index
    %113 = vector.load %arg16[%c0_110, %c300] : memref<16x512xf32, #tpu.memory_space<vmem>>, vector<16x20xf32>
    tpu.vector_store %arg16[%c0_110, %c300], %112 {strides = array<i32>} : memref<16x512xf32, #tpu.memory_space<vmem>>, vector<16x20xf32>,
    %c3_111 = arith.constant 3 : index
    %c1_112 = arith.constant 1 : index
    %c0_113 = arith.constant 0 : index
    %114 = vector.load %arg15[%c3_111, %c1_112, %c0_113] : memref<8x8x20xf32, #tpu.memory_space<vmem>>, vector<4x4x20xf32>
    %115 = vector.shape_cast %114 : vector<4x4x20xf32> to vector<16x20xf32>
    %c0_114 = arith.constant 0 : index
    %c320 = arith.constant 320 : index
    %116 = vector.load %arg16[%c0_114, %c320] : memref<16x512xf32, #tpu.memory_space<vmem>>, vector<16x20xf32>
    tpu.vector_store %arg16[%c0_114, %c320], %115 {strides = array<i32>} : memref<16x512xf32, #tpu.memory_space<vmem>>, vector<16x20xf32>,
    %c3_115 = arith.constant 3 : index
    %c2_116 = arith.constant 2 : index
    %c0_117 = arith.constant 0 : index
    %117 = vector.load %arg15[%c3_115, %c2_116, %c0_117] : memref<8x8x20xf32, #tpu.memory_space<vmem>>, vector<4x4x20xf32>
    %118 = vector.shape_cast %117 : vector<4x4x20xf32> to vector<16x20xf32>
    %c0_118 = arith.constant 0 : index
    %c340 = arith.constant 340 : index
    %119 = vector.load %arg16[%c0_118, %c340] : memref<16x512xf32, #tpu.memory_space<vmem>>, vector<16x20xf32>
    tpu.vector_store %arg16[%c0_118, %c340], %118 {strides = array<i32>} : memref<16x512xf32, #tpu.memory_space<vmem>>, vector<16x20xf32>,
    %c3_119 = arith.constant 3 : index
    %c3_120 = arith.constant 3 : index
    %c0_121 = arith.constant 0 : index
    %120 = vector.load %arg15[%c3_119, %c3_120, %c0_121] : memref<8x8x20xf32, #tpu.memory_space<vmem>>, vector<4x4x20xf32>
    %121 = vector.shape_cast %120 : vector<4x4x20xf32> to vector<16x20xf32>
    %c0_122 = arith.constant 0 : index
    %c360 = arith.constant 360 : index
    %122 = vector.load %arg16[%c0_122, %c360] : memref<16x512xf32, #tpu.memory_space<vmem>>, vector<16x20xf32>
    tpu.vector_store %arg16[%c0_122, %c360], %121 {strides = array<i32>} : memref<16x512xf32, #tpu.memory_space<vmem>>, vector<16x20xf32>,
    %c3_123 = arith.constant 3 : index
    %c4_124 = arith.constant 4 : index
    %c0_125 = arith.constant 0 : index
    %123 = vector.load %arg15[%c3_123, %c4_124, %c0_125] : memref<8x8x20xf32, #tpu.memory_space<vmem>>, vector<4x4x20xf32>
    %124 = vector.shape_cast %123 : vector<4x4x20xf32> to vector<16x20xf32>
    %c0_126 = arith.constant 0 : index
    %c380 = arith.constant 380 : index
    %125 = vector.load %arg16[%c0_126, %c380] : memref<16x512xf32, #tpu.memory_space<vmem>>, vector<16x20xf32>
    tpu.vector_store %arg16[%c0_126, %c380], %124 {strides = array<i32>} : memref<16x512xf32, #tpu.memory_space<vmem>>, vector<16x20xf32>,
    %c4_127 = arith.constant 4 : index
    %c0_128 = arith.constant 0 : index
    %c0_129 = arith.constant 0 : index
    %126 = vector.load %arg15[%c4_127, %c0_128, %c0_129] : memref<8x8x20xf32, #tpu.memory_space<vmem>>, vector<4x4x20xf32>
    %127 = vector.shape_cast %126 : vector<4x4x20xf32> to vector<16x20xf32>
    %c0_130 = arith.constant 0 : index
    %c400 = arith.constant 400 : index
    %128 = vector.load %arg16[%c0_130, %c400] : memref<16x512xf32, #tpu.memory_space<vmem>>, vector<16x20xf32>
    tpu.vector_store %arg16[%c0_130, %c400], %127 {strides = array<i32>} : memref<16x512xf32, #tpu.memory_space<vmem>>, vector<16x20xf32>,
    %c4_131 = arith.constant 4 : index
    %c1_132 = arith.constant 1 : index
    %c0_133 = arith.constant 0 : index
    %129 = vector.load %arg15[%c4_131, %c1_132, %c0_133] : memref<8x8x20xf32, #tpu.memory_space<vmem>>, vector<4x4x20xf32>
    %130 = vector.shape_cast %129 : vector<4x4x20xf32> to vector<16x20xf32>
    %c0_134 = arith.constant 0 : index
    %c420 = arith.constant 420 : index
    %131 = vector.load %arg16[%c0_134, %c420] : memref<16x512xf32, #tpu.memory_space<vmem>>, vector<16x20xf32>
    tpu.vector_store %arg16[%c0_134, %c420], %130 {strides = array<i32>} : memref<16x512xf32, #tpu.memory_space<vmem>>, vector<16x20xf32>,
    %c4_135 = arith.constant 4 : index
    %c2_136 = arith.constant 2 : index
    %c0_137 = arith.constant 0 : index
    %132 = vector.load %arg15[%c4_135, %c2_136, %c0_137] : memref<8x8x20xf32, #tpu.memory_space<vmem>>, vector<4x4x20xf32>
    %133 = vector.shape_cast %132 : vector<4x4x20xf32> to vector<16x20xf32>
    %c0_138 = arith.constant 0 : index
    %c440 = arith.constant 440 : index
    %134 = vector.load %arg16[%c0_138, %c440] : memref<16x512xf32, #tpu.memory_space<vmem>>, vector<16x20xf32>
    tpu.vector_store %arg16[%c0_138, %c440], %133 {strides = array<i32>} : memref<16x512xf32, #tpu.memory_space<vmem>>, vector<16x20xf32>,
    %c4_139 = arith.constant 4 : index
    %c3_140 = arith.constant 3 : index
    %c0_141 = arith.constant 0 : index
    %135 = vector.load %arg15[%c4_139, %c3_140, %c0_141] : memref<8x8x20xf32, #tpu.memory_space<vmem>>, vector<4x4x20xf32>
    %136 = vector.shape_cast %135 : vector<4x4x20xf32> to vector<16x20xf32>
    %c0_142 = arith.constant 0 : index
    %c460 = arith.constant 460 : index
    %137 = vector.load %arg16[%c0_142, %c460] : memref<16x512xf32, #tpu.memory_space<vmem>>, vector<16x20xf32>
    tpu.vector_store %arg16[%c0_142, %c460], %136 {strides = array<i32>} : memref<16x512xf32, #tpu.memory_space<vmem>>, vector<16x20xf32>,
    %c4_143 = arith.constant 4 : index
    %c4_144 = arith.constant 4 : index
    %c0_145 = arith.constant 0 : index
    %138 = vector.load %arg15[%c4_143, %c4_144, %c0_145] : memref<8x8x20xf32, #tpu.memory_space<vmem>>, vector<4x4x20xf32>
    %139 = vector.shape_cast %138 : vector<4x4x20xf32> to vector<16x20xf32>
    %c0_146 = arith.constant 0 : index
    %c480 = arith.constant 480 : index
    %140 = vector.load %arg16[%c0_146, %c480] : memref<16x512xf32, #tpu.memory_space<vmem>>, vector<16x20xf32>
    tpu.vector_store %arg16[%c0_146, %c480], %139 {strides = array<i32>} : memref<16x512xf32, #tpu.memory_space<vmem>>, vector<16x20xf32>,
    %c0_147 = arith.constant 0 : index
    %c0_148 = arith.constant 0 : index
    %141 = vector.load %arg16[%c0_147, %c0_148] : memref<16x512xf32, #tpu.memory_space<vmem>>, vector<16x512xf32>
    %c0_149 = arith.constant 0 : index
    %c0_150 = arith.constant 0 : index
    %142 = vector.load %arg9[%c0_149, %c0_150] : memref<512x32xf32, #tpu.memory_space<vmem>>, vector<512x32xf32>
    %cst_151 = arith.constant dense<0.000000e+00> : vector<16x32xf32>
    %143 = tpu.matmul %141, %142, %cst_151 {dimension_numbers = #tpu.dot_dimension_numbers<[1], [0], [0], [1], [0, 0, 1, 1], [], []>} : vector<16x512xf32>, vector<512x32xf32>, vector<16x32xf32> -> vector<16x32xf32>
    %c0_152 = arith.constant 0 : index
    %c0_153 = arith.constant 0 : index
    %144 = vector.load %arg10[%c0_152, %c0_153] : memref<1x32xf32, #tpu.memory_space<vmem>>, vector<1x32xf32>
    %145 = vector.broadcast %144 : vector<1x32xf32> to vector<16x32xf32>
    %146 = arith.addf %143, %145 : vector<16x32xf32>
    %147 = arith.negf %146 : vector<16x32xf32>
    %148 = math.exp %147 : vector<16x32xf32>
    %cst_154 = arith.constant 1.000000e+00 : f32
    %149 = vector.broadcast %cst_154 : f32 to vector<16x32xf32>
    %150 = arith.addf %149, %148 : vector<16x32xf32>
    %151 = arith.divf %149, %150 : vector<16x32xf32>
    %152 = vector.extract_strided_slice %146 {offsets = [0, 24], sizes = [16, 8], strides = [1, 1]} : vector<16x32xf32> to vector<16x8xf32>
    %153 = math.tanh %152 : vector<16x8xf32>
    %154 = vector.extract_strided_slice %151 {offsets = [0, 0], sizes = [16, 8], strides = [1, 1]} : vector<16x32xf32> to vector<16x8xf32>
    %155 = vector.extract_strided_slice %151 {offsets = [0, 8], sizes = [16, 8], strides = [1, 1]} : vector<16x32xf32> to vector<16x8xf32>
    %156 = vector.extract_strided_slice %151 {offsets = [0, 16], sizes = [16, 8], strides = [1, 1]} : vector<16x32xf32> to vector<16x8xf32>
    %c0_155 = arith.constant 0 : index
    %c0_156 = arith.constant 0 : index
    %c0_157 = arith.constant 0 : index
    %157 = vector.load %arg5[%c0_155, %c0_156, %c0_157] : memref<1x16x8xf32, #tpu.memory_space<vmem>>, vector<1x16x8xf32>
    %158 = vector.shape_cast %157 : vector<1x16x8xf32> to vector<16x8xf32>
    %159 = arith.mulf %155, %158 : vector<16x8xf32>
    %160 = arith.mulf %154, %153 : vector<16x8xf32>
    %161 = arith.addf %159, %160 : vector<16x8xf32>
    %162 = math.tanh %161 : vector<16x8xf32>
    %163 = arith.mulf %156, %162 : vector<16x8xf32>
    %c0_158 = arith.constant 0 : index
    %c0_159 = arith.constant 0 : index
    %c0_160 = arith.constant 0 : index
    %164 = vector.load %arg12[%c0_158, %c0_159, %c0_160] : memref<1x16x8xf32, #tpu.memory_space<vmem>>, vector<1x16x8xf32>
    %165 = vector.shape_cast %164 : vector<1x16x8xf32> to vector<16x8xf32>
    %166 = vector.shape_cast %163 : vector<16x8xf32> to vector<1x16x8xf32>
    tpu.vector_store %arg12[%c0_158, %c0_159, %c0_160], %166 {strides = array<i32>} : memref<1x16x8xf32, #tpu.memory_space<vmem>>, vector<1x16x8xf32>,
    %c0_161 = arith.constant 0 : index
    %c0_162 = arith.constant 0 : index
    %c0_163 = arith.constant 0 : index
    %167 = vector.load %arg13[%c0_161, %c0_162, %c0_163] : memref<1x16x8xf32, #tpu.memory_space<vmem>>, vector<1x16x8xf32>
    %168 = vector.shape_cast %167 : vector<1x16x8xf32> to vector<16x8xf32>
    %169 = vector.shape_cast %161 : vector<16x8xf32> to vector<1x16x8xf32>
    tpu.vector_store %arg13[%c0_161, %c0_162, %c0_163], %169 {strides = array<i32>} : memref<1x16x8xf32, #tpu.memory_space<vmem>>, vector<1x16x8xf32>,
    %c0_164 = arith.constant 0 : index
    %c0_165 = arith.constant 0 : index
    %170 = vector.load %arg11[%c0_164, %c0_165] : memref<8x128xf32, #tpu.memory_space<vmem>>, vector<8x128xf32>
    %cst_166 = arith.constant dense<0.000000e+00> : vector<16x128xf32>
    %171 = tpu.matmul %163, %170, %cst_166 {dimension_numbers = #tpu.dot_dimension_numbers<[1], [0], [0], [1], [0, 0, 1, 1], [], []>} : vector<16x8xf32>, vector<8x128xf32>, vector<16x128xf32> -> vector<16x128xf32>
    %c0_167 = arith.constant 0 : index
    %c0_168 = arith.constant 0 : index
    %c0_169 = arith.constant 0 : index
    %172 = vector.load %arg6[%c0_167, %c0_168, %c0_169] : memref<1x16x128xf32, #tpu.memory_space<vmem>>, vector<1x16x128xf32>
    %173 = vector.shape_cast %172 : vector<1x16x128xf32> to vector<16x128xf32>
    %174 = arith.addf %171, %173 : vector<16x128xf32>
    %c0_170 = arith.constant 0 : index
    %c0_171 = arith.constant 0 : index
    %c0_172 = arith.constant 0 : index
    %175 = vector.load %arg14[%c0_170, %c0_171, %c0_172] : memref<1x16x128xf32, #tpu.memory_space<vmem>>, vector<1x16x128xf32>
    %176 = vector.shape_cast %175 : vector<1x16x128xf32> to vector<16x128xf32>
    %177 = vector.shape_cast %174 : vector<16x128xf32> to vector<1x16x128xf32>
    tpu.vector_store %arg14[%c0_170, %c0_171, %c0_172], %177 {strides = array<i32>} : memref<1x16x128xf32, #tpu.memory_space<vmem>>, vector<1x16x128xf32>,
    return
  }
  func.func @transform_0(%arg0: i32) -> (i32, i32, i32) {
    %c0_i32 = arith.constant 0 : i32
    %c0_i32_0 = arith.constant 0 : i32
    %c0_i32_1 = arith.constant 0 : i32
    return %arg0, %c0_i32, %c0_i32_0 : i32, i32, i32
  }
  func.func @transform_1(%arg0: i32) -> (i32, i32, i32) {
    %c0_i32 = arith.constant 0 : i32
    %c0_i32_0 = arith.constant 0 : i32
    %c0_i32_1 = arith.constant 0 : i32
    return %arg0, %c0_i32, %c0_i32_0 : i32, i32, i32
  }
  func.func @transform_2(%arg0: i32) -> (i32, i32, i32) {
    %c0_i32 = arith.constant 0 : i32
    %c0_i32_0 = arith.constant 0 : i32
    %c0_i32_1 = arith.constant 0 : i32
    return %arg0, %c0_i32, %c0_i32_0 : i32, i32, i32
  }
  func.func @transform_3(%arg0: i32) -> (i32, i32, i32) {
    %c0_i32 = arith.constant 0 : i32
    %c0_i32_0 = arith.constant 0 : i32
    %c0_i32_1 = arith.constant 0 : i32
    return %arg0, %c0_i32, %c0_i32_0 : i32, i32, i32
  }
  func.func @transform_4(%arg0: i32) -> (i32, i32, i32) {
    %c0_i32 = arith.constant 0 : i32
    %c0_i32_0 = arith.constant 0 : i32
    %c0_i32_1 = arith.constant 0 : i32
    return %arg0, %c0_i32, %c0_i32_0 : i32, i32, i32
  }
  func.func @transform_5(%arg0: i32) -> (i32, i32, i32) {
    %c0_i32 = arith.constant 0 : i32
    %c0_i32_0 = arith.constant 0 : i32
    %c0_i32_1 = arith.constant 0 : i32
    return %arg0, %c0_i32, %c0_i32_0 : i32, i32, i32
  }
  func.func @transform_6(%arg0: i32) -> (i32, i32, i32) {
    %c0_i32 = arith.constant 0 : i32
    %c0_i32_0 = arith.constant 0 : i32
    %c0_i32_1 = arith.constant 0 : i32
    %c0_i32_2 = arith.constant 0 : i32
    return %c0_i32, %c0_i32_0, %c0_i32_1 : i32, i32, i32
  }
  func.func @transform_7(%arg0: i32) -> (i32, i32, i32) {
    %c0_i32 = arith.constant 0 : i32
    %c0_i32_0 = arith.constant 0 : i32
    %c0_i32_1 = arith.constant 0 : i32
    %c0_i32_2 = arith.constant 0 : i32
    return %c0_i32, %c0_i32_0, %c0_i32_1 : i32, i32, i32
  }
  func.func @transform_8(%arg0: i32) -> (i32, i32) {
    %c0_i32 = arith.constant 0 : i32
    %c0_i32_0 = arith.constant 0 : i32
    %c0_i32_1 = arith.constant 0 : i32
    return %c0_i32, %c0_i32_0 : i32, i32
  }
  func.func @transform_9(%arg0: i32) -> (i32, i32) {
    %c0_i32 = arith.constant 0 : i32
    %c0_i32_0 = arith.constant 0 : i32
    %c0_i32_1 = arith.constant 0 : i32
    return %c0_i32, %c0_i32_0 : i32, i32
  }
  func.func @transform_10(%arg0: i32) -> (i32, i32) {
    %c0_i32 = arith.constant 0 : i32
    %c0_i32_0 = arith.constant 0 : i32
    %c0_i32_1 = arith.constant 0 : i32
    return %c0_i32, %c0_i32_0 : i32, i32
  }
  func.func @transform_11(%arg0: i32) -> (i32, i32, i32) {
    %c0_i32 = arith.constant 0 : i32
    %c0_i32_0 = arith.constant 0 : i32
    %c0_i32_1 = arith.constant 0 : i32
    return %arg0, %c0_i32, %c0_i32_0 : i32, i32, i32
  }
  func.func @transform_12(%arg0: i32) -> (i32, i32, i32) {
    %c0_i32 = arith.constant 0 : i32
    %c0_i32_0 = arith.constant 0 : i32
    %c0_i32_1 = arith.constant 0 : i32
    return %arg0, %c0_i32, %c0_i32_0 : i32, i32, i32
  }
  func.func @transform_13(%arg0: i32) -> (i32, i32, i32) {
    %c0_i32 = arith.constant 0 : i32
    %c0_i32_0 = arith.constant 0 : i32
    %c0_i32_1 = arith.constant 0 : i32
    return %arg0, %c0_i32, %c0_i32_0 : i32, i32, i32
  }
}

</mosaic_0001>

<bundles_post_ra>
// kernel: gen_core_forward.1
= control target key start
LH: loop header
LB: loop body
LE: loop exit
PB: predicated region body
PF: predicated region fallthrough
CT: control target
= control target key end

     0   :  { %s2969_s0 = inlined_call_operand.vmem [shape: f32[2,1,4], index: 0, kind: input, shape index: {}]   ;;  %s2970_s1 = inlined_call_operand.vmem [shape: f32[2,1,4], index: 1, kind: input, shape index: {}]   ;;  %s2971_s2 = inlined_call_operand.vmem [shape: f32[2,16,4], index: 2, kind: input, shape index: {}]   ;;  %s2972_s3 = inlined_call_operand.vmem [shape: f32[2,16,8], index: 3, kind: input, shape index: {}]   ;;  %s2973_s4 = inlined_call_operand.vmem [shape: f32[2,16,8], index: 4, kind: input, shape index: {}]   ;;  %s2974_s5 = inlined_call_operand.vmem [shape: f32[2,16,128], index: 5, kind: input, shape index: {}, may-alias: {5,13}]   ;;  %s2975_s6 = inlined_call_operand.vmem [shape: f32[4,16,4], index: 6, kind: input, shape index: {}]   ;;  %s2976_s7 = inlined_call_operand.vmem [shape: f32[4,16,4], index: 7, kind: input, shape index: {}]   ;;  %s2977_s8 = inlined_call_operand.vmem [shape: f32[512,32], index: 8, kind: input, shape index: {}]   ;;  %s2978_s9 = inlined_call_operand.vmem [shape: f32[1,32], index: 9, kind: input, shape index: {}]   ;;  %s2979_s10 = inlined_call_operand.vmem [shape: f32[8,128], index: 10, kind: input, shape index: {}]   ;;  %s2980_s11 = inlined_call_operand.hbm [shape: f32[2,16,8], index: 11, kind: output, shape index: {0}]   ;;  %s2981_s12 = inlined_call_operand.hbm [shape: f32[2,16,8], index: 12, kind: output, shape index: {1}]   ;;  %s2982_s13 = inlined_call_operand.vmem [shape: f32[2,16,128], index: 13, kind: output, shape index: {2}, may-alias: {5,13}]  }
   0x1   :  { %3015 = sst [smem:[#allocation13_spill]] %s2969_s0 }
   0x2   :  { %3016 = sst [smem:[#allocation14_spill]] %s2970_s1 }
   0x3   :  { %3017 = sst [smem:[#allocation15_spill]] %s2971_s2 }
   0x4   :  { %3018 = sst [smem:[#allocation16_spill]] %s2972_s3 }
   0x5   :  { %3019 = sst [smem:[#allocation17_spill]] %s2973_s4 }
   0x6   :  { %19 = vsyncpa [#allocation5], 0 }
   0x7   :  { %21 = vsyncpa [#allocation5 + $0x1], 0 }
   0x8   :  { %22 = vsyncpa [#allocation7], 0 }
   0x9   :  { %24 = vsyncpa [#allocation7 + $0x1], 0  ;;  %s2380_s25 = smov 0   ;;  %s2382_s26 = smov 0  }
   0xa   :  { %s2384_s27 = smov 0   ;;  %s2386_s28 = smov 0  }
   0xb LB: > { %3020 = sst [smem:[#allocation10_spill]] %s2271_s27  ;;  %s2401_s29 = sadd.s32 4294967295, %s2275_s28   ;;  %s2275_s28 = sphi %s2386_s28, %s3055_s28   ;;  %s2271_s27 = sphi %s2384_s27, %s3057_s27   ;;  %s2267_s26 = sphi %s2382_s26, %s3059_s26   ;;  %s2263_s25 = sphi %s2380_s25, %s3058_s25  }
   0xc   : > { %s1830_s30 = sadd.s32 4294967294, %s2275_s28   ;;  %s2405_s14 = sadd.s32 1, %s2275_s28  }
   0xd   : > { %3021 = sst [smem:[#allocation11_spill]] %s2405_s14  ;;  %s298_s15 = sadd.s32 1, %s2271_s27 }
   0xe   : > { %s295_s16 = ssub.s32 %s2275_s28, %s2405_s14  ;;  %p308_p0 = scmp.ne.s32.totalorder %s2271_s27, %s2267_s26 }
   0xf   : > { %p296_p1 = scmp.eq.s32.totalorder %s295_s16, 0  ;;  %p309_p2 = scmp.eq.s32.totalorder %s2401_s29, 1 }
  0x10   : > { %p314_p3 = scmp.ne.s32.totalorder %s2267_s26, %s2263_s25  ;;  %p315_p4 = scmp.eq.s32.totalorder %s1830_s30, 1 }
  0x11   : > { %s2416_s17 = scalar_select %p296_p1, %s2271_s27, %s298_s15  }
  0x12   : > { %p2418_p5 = por %p309_p2, %p308_p0  ;;  %p2422_p6 = por %p315_p4, %p314_p3 }
  0x13   : > { %3022 = sst [smem:[#allocation12_spill]] %s2416_s17  ;;  %p1833_p7 = scmp.ge.s32.totalorder %s2275_s28, 1 }
  0x14   : > { %p444_p8 = scmp.lt.s32.totalorder %s2275_s28, 3 }
  0x16   : > { %p445_p9 = pnand %p1833_p7, %p444_p8 }
  0x17   : > { %p519_p10 = scmp.lt.s32.totalorder (!%p445_p9), %s2401_s29, 1  ;;  %v2277_v0 = vmov (!%p445_p9), 0   ;;  %vm644_vm0 = vcmask (!%p445_p9), 162816   ;;  %v2278_v1 = vmov (!%p445_p9), 0.0   ;;  %s3025_s1 = sld [smem:[#allocation14_spill]] (!%p445_p9)  ;;  %v2279_v4 = vmov (!%p445_p9), 1  }
  0x18   : > { %448 = sbr.rel (%p445_p9) target bundleno = 1437 (0x59d), region = 64  ;;  %2105 = vset.pattern.permute.xlu1 (!%p445_p9), %v2277_v0  ;;  %2103 = vset.pattern.permute.xlu0 (!%p445_p9), %v2277_v0  ;;  %645 = vst.msk [vmem:[#allocation2] sm:$0xff] (!%p445_p9), %vm644_vm0, %v2278_v1  ;;  %646 = vst.msk [vmem:[#allocation2 + $0x8] sm:$0xff] (!%p445_p9), %vm644_vm0, %v2278_v1  ;;  %s3026_s0 = sld [smem:[#allocation13_spill]] (!%p445_p9)  ;;  %v2280_v6 = vmov (!%p445_p9), 2   ;;  %v2281_v8 = vmov (!%p445_p9), 3  }
  0x19   : > { %647 = vst.msk [vmem:[#allocation2 + $0x10] sm:$0xff] (!%p445_p9), %vm644_vm0, %v2278_v1  ;;  %648 = vst.msk [vmem:[#allocation2 + $0x18] sm:$0xff] (!%p445_p9), %vm644_vm0, %v2278_v1  ;;  %s3027_s2 = sld [smem:[#allocation15_spill]] (!%p445_p9)  ;;  %s2991_s27 = smov (!%p445_p9), 20   ;;  %vm662_vm1 = vcmask (!%p445_p9), 60416   ;;  %v551_v23 = vld [vmem:[%s2975_s6] sm:$0xff] (!%p445_p9) }
  0x1a   : > { %649 = vst.msk [vmem:[#allocation2 + $0x20] sm:$0xff] (!%p445_p9), %vm644_vm0, %v2278_v1  ;;  %650 = vst.msk [vmem:[#allocation2 + $0x28] sm:$0xff] (!%p445_p9), %vm644_vm0, %v2278_v1  ;;  %s2986_s17 = smov (!%p445_p9), 80   ;;  %s2988_s21 = smov (!%p445_p9), 40   ;;  %v1847_v25 = vld [vmem:[%s2975_s6 + $0x10] sm:$0xff] (!%p445_p9)  ;;  %v552_v27 = vld [vmem:[%s2975_s6 + $0x8] sm:$0xff] (!%p445_p9) }
  0x1b   : > { %651 = vst.msk [vmem:[#allocation2 + $0x30] sm:$0xff] (!%p445_p9), %vm644_vm0, %v2278_v1  ;;  %652 = vst.msk [vmem:[#allocation2 + $0x38] sm:$0xff] (!%p445_p9), %vm644_vm0, %v2278_v1  ;;  %s2987_s22 = smov (!%p445_p9), 60   ;;  %s3028_s3 = sld [smem:[#allocation16_spill]] (!%p445_p9)  ;;  %v1848_v29 = vld [vmem:[%s2975_s6 + $0x18] sm:$0xff] (!%p445_p9)  ;;  %v1849_v31 = vld [vmem:[%s2975_s6 + $0x20] sm:$0xff] (!%p445_p9) }
  0x1c   : > { %732 = vst [vmem:[#allocation3] sm:$0xff] (!%p445_p9), %v2278_v1  ;;  %733 = vst [vmem:[#allocation3 + $0x8] sm:$0xff] (!%p445_p9), %v2278_v1  ;;  %v1854_v36 = vld [vmem:[%s2976_s7 + $0x10] sm:$0xff] (!%p445_p9)  ;;  %v598_v38 = vld [vmem:[%s2976_s7] sm:$0xff] (!%p445_p9)  ;;  %vm770_vm2 = vcmask (!%p445_p9), 326816   ;;  %vm789_vm3 = vcmask (!%p445_p9), 490816  }
  0x1d   : > { %734 = vst [vmem:[#allocation3 + $0x10] sm:$0xff] (!%p445_p9), %v2278_v1  ;;  %735 = vst [vmem:[#allocation3 + $0x18] sm:$0xff] (!%p445_p9), %v2278_v1  ;;  %v1850_v42 = vld [vmem:[%s2975_s6 + $0x28] sm:$0xff] (!%p445_p9)  ;;  %v1856_v43 = vld [vmem:[%s2976_s7 + $0x20] sm:$0xff] (!%p445_p9)  ;;  %vm808_vm4 = vcmask (!%p445_p9), 654816   ;;  %vm3014_vm5 = vcmask (!%p445_p9), 818816  }
  0x1e   : > { %736 = vst [vmem:[#allocation3 + $0x20] sm:$0xff] (!%p445_p9), %v2278_v1  ;;  %737 = vst [vmem:[#allocation3 + $0x28] sm:$0xff] (!%p445_p9), %v2278_v1  ;;  %v1851_v44 = vld [vmem:[%s2975_s6 + $0x30] sm:$0xff] (!%p445_p9)  ;;  %v1855_v48 = vld [vmem:[%s2976_s7 + $0x18] sm:$0xff] (!%p445_p9)  ;;  %vm683_vm6 = vcmask (!%p445_p9), 93248   ;;  %vm704_vm7 = vcmask (!%p445_p9), 126048  }
  0x1f   : > { %s520_s20 = scalar_select %p519_p10, %s2401_s29, 1  ;;  %738 = vst [vmem:[#allocation3 + $0x30] sm:$0xff] %v2278_v1  ;;  %739 = vst [vmem:[#allocation3 + $0x38] sm:$0xff] %v2278_v1  ;;  %v2113_v10 = vld [vmem:[#allocation2 + $0x1] ss:$8 sps:$4 sm:$0xff]   ;;  %v1852_v50 = vld [vmem:[%s2975_s6 + $0x38] sm:$0xff] }
  0x20   : > { %v2116_v11 = vld [vmem:[#allocation2 + $0x4] ss:$8 sps:$4 sm:$0xff]   ;;  %v2120_v17 = vld [vmem:[#allocation2] ss:$8 sps:$4 sm:$0xff]   ;;  %v1858_v58 = vld [vmem:[%s2976_s7 + $0x30] sm:$0xff]  ;;  %vm727_vm8 = vcmask 158848  }
  0x21   : > { %s524_s23 = scalar_lea.vmem %s3025_s1, %s520_s20  ;;  %s521_s15 = scalar_lea.vmem %s3026_s0, %s520_s20  ;;  %v2114_v14 = vld [vmem:[#allocation2 + $0x2] ss:$8 sps:$4 sm:$0xff]   ;;  %752 = vst.msk [vmem:[#allocation3] sm:$0xff] %vm644_vm0, %v2120_v17  ;;  %v1859_v1 = vld [vmem:[%s2976_s7 + $0x38] sm:$0xff]  ;;  %vm868_vm9 = vcmask 97280   ;;  %vm888_vm10 = vcmask 261216  }
  0x22   : > { %v1853_v2 = vld [vmem:[%s524_s23] ss:$0 sm:$0xff]  ;;  %s2444_s16 = sshll.u32 %s520_s20, 4  ;;  %s2992_s20 = smov 16   ;;  %v2118_v13 = vld [vmem:[#allocation2 + $0x31] ss:$8 sps:$4 sm:$0xff]  }
  0x23   : > { %v1846_v3 = vld [vmem:[%s521_s15] ss:$0 sm:$0xff]  ;;  %606 = vperm.xlu1 %2105, %v1853_v2   ;;  %s529_s14 = scalar_lea.vmem %s3027_s2, %s2444_s16  ;;  %v2115_v15 = vld [vmem:[#allocation2 + $0x3] ss:$8 sps:$4 sm:$0xff]   ;;  %v2117_v16 = vld [vmem:[#allocation2 + $0x30] ss:$8 sps:$4 sm:$0xff]   ;;  %s534_s30 = scalar_lea.vmem %s3028_s3, %s2444_s16 }
  0x24   : > { %559 = vperm.xlu0 %2103, %v1846_v3   ;;  %v709_v5 = vld [vmem:[%s529_s14] sm:$0xff]  ;;  %v710_v9 = vld [vmem:[%s529_s14 + $0x8] sm:$0xff]  ;;  %s2990_s14 = smov 36   ;;  %v2119_v18 = vld [vmem:[#allocation2 + $0x32] ss:$8 sps:$4 sm:$0xff]   ;;  %s2989_s15 = smov 56  }
  0x25   : > { %v713_v7 = vcombine.high %v709_v5, %v709_v5  ;;  %v714_v12 = vcombine.high %v710_v9, %v710_v9  ;;  %v653_v19 = vld [vmem:[%s534_s30] sm:$0xff]  ;;  %v654_v32 = vld [vmem:[%s534_s30 + $0x8] sm:$0xff]  ;;  %s2293_s30 = smov 32   ;;  %s2999_s23 = smov 52   ;;  %vm907_vm11 = vcmask 425216   ;;  %vm926_vm12 = vcmask 589216  }
  0x26   : > { %v657_v20 = vcombine.high %v653_v19, %v653_v19  ;;  %663 = vst.msk [vmem:[#allocation2 + $0x12] sm:$0xf] %vm662_vm1, %v653_v19  ;;  %665 = vst.msk [vmem:[#allocation2 + $0x22] sm:$0xf] %vm662_vm1, %v654_v32  ;;  %v658_v41 = vcombine.high %v654_v32, %v654_v32  ;;  %v599_v52 = vld [vmem:[%s2976_s7 + $0x8] sm:$0xff]  ;;  %v1230_v32 = vld [vmem:[%s2977_s8] sm:$0xff] }
  0x27   : > { %2106 = vset.pattern.permute.xlu1 %v2279_v4  ;;  %v1857_v57 = vld [vmem:[%s2976_s7 + $0x28] sm:$0xff]  ;;  %s3005_s24 = smov 4   ;;  %s2996_s0 = smov 72   ;;  %vm3013_vm13 = vcmask 982816   ;;  %vm3012_vm14 = vcmask 1048512   ;;  %vm945_vm15 = vcmask 753216  }
  0x28   : > { %2104 = vset.pattern.permute.xlu0 %v2279_v4  ;;  %615 = vperm.xlu1 %2106, %v1853_v2   ;;  %664 = vst.msk [vmem:[#allocation2 + $0x1a] sm:$0xf] %vm662_vm1, %v657_v20  ;;  %666 = vst.msk [vmem:[#allocation2 + $0x2a] sm:$0xf] %vm662_vm1, %v658_v41  ;;  %v1249_v41 = vld [vmem:[%s2977_s8 + $0x98] sm:$0xff]  ;;  %vm1005_vm1 = vcmask 195616  }
  0x29   : > { %568 = vperm.xlu0 %2104, %v1846_v3   ;;  %s3052_s4 = sld [smem:[#allocation17_spill]]  ;;  %s2307_s3 = smov [#allocation4]  }
  0x2c   : > { %2107 = vset.pattern.permute.xlu1 %v2280_v6 }
  0x2d   : > { %2108 = vset.pattern.permute.xlu0 %v2280_v6  ;;  %579 = vperm.xlu1 %2107, %v1846_v3  }
  0x2e   : > { %626 = vperm.xlu0 %2108, %v1853_v2  }
  0x31   : > { %2109 = vset.pattern.permute.xlu1 %v2281_v8 }
  0x32   : > { %717 = vrot.lane.b32.xlu0 %v713_v7, %s2992_s20  ;;  %590 = vperm.xlu1 %2109, %v1846_v3  }
  0x33   : > { %2110 = vset.pattern.permute.xlu0 %v2281_v8 }
  0x36   : > { %719 = vrot.lane.b32.xlu0 %v710_v9, %s2992_s20  ;;  %637 = vperm.xlu1 %2109, %v1853_v2  }
  0x3a   : > { %764 = vrot.lane.b32.xlu0 %v2113_v10, %s2991_s27  ;;  %715 = vrot.lane.b32.xlu1 %v709_v5, %s2992_s20  ;;  %s3029_s27 = smov 16  }
  0x3e   : > { %821 = vrot.lane.b32.xlu0 %v2116_v11, %s2986_s17  ;;  %721 = vrot.lane.b32.xlu1 %v714_v12, %s2992_s20  ;;  %s2993_s17 = smov 8  }
  0x42   : > { %1158 = vrot.lane.b32.xlu0 %v2118_v13, %s2990_s14  ;;  %783 = vrot.lane.b32.xlu1 %v2114_v14, %s2988_s21  ;;  %s2290_s21 = smov 12   ;;  %s3000_s14 = smov 120  }
  0x46   : > { %802 = vrot.lane.b32.xlu1 %v2115_v15, %s2987_s22  ;;  %s2997_s22 = smov 76  }
  0x4a   : > { %1139 = vrot.lane.b32.xlu1 %v2117_v16, %s2992_s20  ;;  %s3006_s20 = smov 112  }
  0x4e   : > { %1177 = vrot.lane.b32.xlu1 %v2119_v18, %s2989_s15  ;;  %s2995_s15 = smov 100  }
  0xa2   : > { %v607_v21 = vpop.permute.xlu1 %606 }
  0xa3   : > { %v560_v22 = vpop.permute.xlu0 %559  ;;  %v609_v47 = vmul.f32 %v607_v21, %v598_v38  ;;  %v610_v0 = vmul.f32 %v607_v21, %v599_v52 }
  0xa4   : > { %v562_v28 = vmul.f32 %v560_v22, %v551_v23  ;;  %v563_v35 = vmul.f32 %v560_v22, %v552_v27  ;;  %v2123_v23 = vld [vmem:[#allocation2 + $0x33] ss:$8 sps:$4 sm:$0xff]  }
  0xa7   : > { %v616_v24 = vpop.permute.xlu1 %615 }
  0xa8   : > { %v569_v26 = vpop.permute.xlu0 %568  ;;  %v618_v45 = vmul.f32 %v1854_v36, %v616_v24  ;;  %v619_v59 = vmul.f32 %v1855_v48, %v616_v24  ;;  %v1231_v36 = vld [vmem:[%s2977_s8 + $0x8] sm:$0xff] }
  0xa9   : > { %v571_v30 = vmul.f32 %v1847_v25, %v569_v26  ;;  %v572_v37 = vmul.f32 %v1848_v29, %v569_v26 }
  0xaa   : > { %v620_v60 = vadd.f32 %v618_v45, %v609_v47  ;;  %v621_v7 = vadd.f32 %v619_v59, %v610_v0 }
  0xab   : > { %v573_v39 = vadd.f32 %v571_v30, %v562_v28  ;;  %v574_v49 = vadd.f32 %v572_v37, %v563_v35  ;;  %v1246_v30 = vld [vmem:[%s2977_s8 + $0x80] sm:$0xff]  ;;  %v1966_v37 = vpack.c.bf16 %v1231_v36, %v1230_v32  ;;  %v1279_v32 = vld [vmem:[%s2977_s8 + $0x188] sm:$0xff] }
  0xac   : > { %v580_v33 = vpop.permute.xlu1 %579  ;;  %v1263_v36 = vld [vmem:[%s2977_s8 + $0x108] sm:$0xff] }
  0xad   : > { %v627_v34 = vpop.permute.xlu0 %626  ;;  %v582_v40 = vmul.f32 %v1849_v31, %v580_v33  ;;  %v583_v53 = vmul.f32 %v1850_v42, %v580_v33  ;;  %v1247_v31 = vld [vmem:[%s2977_s8 + $0x88] sm:$0xff] }
  0xae   : > { %v629_v55 = vmul.f32 %v1856_v43, %v627_v34  ;;  %v630_v4 = vmul.f32 %v1857_v57, %v627_v34  ;;  %v1964_v35 = vpack.c.bf16 %v1247_v31, %v1246_v30  ;;  %v1240_v30 = vld [vmem:[%s2977_s8 + $0x50] sm:$0xff]  ;;  %v1278_v31 = vld [vmem:[%s2977_s8 + $0x180] sm:$0xff] }
  0xaf   : > { %v584_v54 = vadd.f32 %v582_v40, %v573_v39  ;;  %v585_v3 = vadd.f32 %v583_v53, %v574_v49  ;;  %v1248_v40 = vld [vmem:[%s2977_s8 + $0x90] sm:$0xff] }
  0xb0   : > { %v631_v5 = vadd.f32 %v629_v55, %v620_v60  ;;  %v632_v13 = vadd.f32 %v630_v4, %v621_v7  ;;  %1965 = vmatprep.subr.bf16.mxu0 %v1964_v35  ;;  %v1968_v43 = vpack.c.bf16 %v1249_v41, %v1248_v40  ;;  %v1232_v60 = vld [vmem:[%s2977_s8 + $0x10] sm:$0xff]  ;;  %v1251_v4 = vld [vmem:[%s2977_s8 + $0xa8] sm:$0xff]  ;;  %v1996_v35 = vpack.c.bf16 %v1279_v32, %v1278_v31  ;;  %v1241_v40 = vld [vmem:[%s2977_s8 + $0x58] sm:$0xff] }
  0xb1   : > { %v2499_v46 = vpop.permute.xlu0 %717  ;;  %v591_v51 = vpop.permute.xlu1 %590  ;;  %1967 = vmatpush3.bf16.msra.mxu0 %v1966_v37  ;;  %v1235_v7 = vld [vmem:[%s2977_s8 + $0x28] sm:$0xff]  ;;  %v1280_v37 = vld [vmem:[%s2977_s8 + $0x190] sm:$0xff] }
  0xb2   : > { %v593_v56 = vmul.f32 %v1851_v44, %v591_v51  ;;  %v594_v61 = vmul.f32 %v1852_v50, %v591_v51  ;;  %1969 = vmatprep.subr.bf16.mxu0 %v1968_v43  ;;  %v1265_v43 = vld [vmem:[%s2977_s8 + $0x118] sm:$0xff]  ;;  %1997 = vmatprep.subr.bf16.mxu1 %v1996_v35  ;;  %v1274_v35 = vld [vmem:[%s2977_s8 + $0x160] sm:$0xff] }
  0xb4   : > { %v595_v62 = vadd.f32 %v593_v56, %v584_v54  ;;  %v596_v8 = vadd.f32 %v594_v61, %v585_v3  ;;  %v1250_v3 = vld [vmem:[%s2977_s8 + $0xa0] sm:$0xff] }
  0xb5   : > { %v2517_v63 = vpop.permute.xlu0 %719  ;;  %v638_v2 = vpop.permute.xlu1 %637 }
  0xb6   : > { %v640_v6 = vmul.f32 %v1858_v58, %v638_v2  ;;  %671 = vrot.lane.b32.xlu0 %v595_v62, %s2993_s17  ;;  %v641_v9 = vmul.f32 %v1859_v1, %v638_v2  ;;  %v669_v15 = vcombine.high %v595_v62, %v595_v62  ;;  %v670_v17 = vcombine.high %v596_v8, %v596_v8  ;;  %v1233_v1 = vld [vmem:[%s2977_s8 + $0x18] sm:$0xff] }
  0xb7   : > { %v1970_v2 = vpack.c.bf16 %v1233_v1, %v1232_v60  ;;  %v1261_v60 = vld [vmem:[%s2977_s8 + $0xf8] sm:$0xff] }
  0xb8   : > { %v642_v10 = vadd.f32 %v640_v6, %v631_v5  ;;  %v643_v14 = vadd.f32 %v641_v9, %v632_v13  ;;  %v1234_v5 = vld [vmem:[%s2977_s8 + $0x20] sm:$0xff]  ;;  %v1972_v6 = vpack.c.bf16 %v1251_v4, %v1250_v3  ;;  %v1253_v9 = vld [vmem:[%s2977_s8 + $0xb8] sm:$0xff]  ;;  %v1268_v3 = vld [vmem:[%s2977_s8 + $0x130] sm:$0xff] }
  0xb9   : > { %v765_v11 = vpop.permute.xlu0 %764  ;;  %v716_v12 = vpop.permute.xlu1 %715  ;;  %1971 = vmatpush3.bf16.msra.mxu0 %v1970_v2  ;;  %v1237_v13 = vld [vmem:[%s2977_s8 + $0x38] sm:$0xff] }
  0xba   : > { %771 = vst.msk [vmem:[#allocation3] sm:$0xff] %vm770_vm2, %v765_v11  ;;  %675 = vrot.lane.b32.xlu0 %v596_v8, %s2993_s17  ;;  %692 = vrot.lane.b32.xlu1 %v642_v10, %s2290_s21  ;;  %v690_v18 = vcombine.high %v642_v10, %v642_v10  ;;  %v691_v20 = vcombine.high %v643_v14, %v643_v14  ;;  %v1252_v8 = vld [vmem:[%s2977_s8 + $0xb0] sm:$0xff]  ;;  %v1285_v1 = vld [vmem:[%s2977_s8 + $0x1b8] sm:$0xff] }
  0xbb   : > { %v1974_v10 = vpack.c.bf16 %v1235_v7, %v1234_v5  ;;  %1973 = vmatprep.subr.bf16.mxu0 %v1972_v6  ;;  %v1976_v11 = vpack.c.bf16 %v1253_v9, %v1252_v8  ;;  %v1269_v4 = vld [vmem:[%s2977_s8 + $0x138] sm:$0xff]  ;;  %v1244_v6 = vld [vmem:[%s2977_s8 + $0x70] sm:$0xff] }
  0xbc   : > { %v1245_v7 = vld [vmem:[%s2977_s8 + $0x78] sm:$0xff] }
  0xbd   : > { %v2526_v16 = vpop.permute.xlu1 %721  ;;  %v822_v22 = vpop.permute.xlu0 %821  ;;  %1975 = vmatpush3.bf16.msra.mxu0 %v1974_v10  ;;  %v1286_v10 = vld [vmem:[%s2977_s8 + $0x1c0] sm:$0xff] }
  0xbe   : > { %673 = vrot.lane.b32.xlu0 %v669_v15, %s2993_s17  ;;  %696 = vrot.lane.b32.xlu1 %v643_v14, %s2290_s21  ;;  %v1254_v15 = vld [vmem:[%s2977_s8 + $0xc0] sm:$0xff] }
  0xbf   : > { %1977 = vmatprep.subr.bf16.mxu0 %v1976_v11  ;;  %v1287_v11 = vld [vmem:[%s2977_s8 + $0x1c8] sm:$0xff] }
  0xc1   : > { %v784_v19 = vpop.permute.xlu1 %783  ;;  %v2539_v25 = vpop.permute.xlu0 %1158 }
  0xc2   : > { %677 = vrot.lane.b32.xlu0 %v670_v17, %s2993_s17  ;;  %694 = vrot.lane.b32.xlu1 %v690_v18, %s2290_s21  ;;  %790 = vst.msk [vmem:[#allocation3] sm:$0xff] %vm789_vm3, %v784_v19  ;;  %s2998_s17 = smov 124  }
  0xc5   : > { %v803_v21 = vpop.permute.xlu1 %802 }
  0xc6   : > { %698 = vrot.lane.b32.xlu1 %v691_v20, %s2290_s21  ;;  %809 = vst.msk [vmem:[#allocation3] sm:$0xff] %vm808_vm4, %v803_v21 }
  0xc7   : > { %828 = vst.msk [vmem:[#allocation3] sm:$0xff] %vm3014_vm5, %v822_v22  ;;  %v1238_v22 = vld [vmem:[%s2977_s8 + $0x40] sm:$0xff]  ;;  %vm983_vm5 = vcmask 1048448  }
  0xc9   : > { %v2537_v24 = vpop.permute.xlu1 %1139 }
  0xca   : > { %1196 = vrot.lane.b32.xlu1 %v2123_v23, %s2997_s22  ;;  %s3004_s22 = smov 92   ;;  %v1239_v23 = vld [vmem:[%s2977_s8 + $0x48] sm:$0xff] }
  0xcd   : > { %v2541_v26 = vpop.permute.xlu1 %1177 }
 0x128   : > { %v672_v27 = vpop.permute.xlu0 %671 }
 0x129   : > { %684 = vst.msk [vmem:[#allocation2 + $0x12] sm:$0xf] %vm683_vm6, %v672_v27 }
 0x12c   : > { %v693_v28 = vpop.permute.xlu1 %692  ;;  %v676_v29 = vpop.permute.xlu0 %675 }
 0x12d   : > { %705 = vst.msk [vmem:[#allocation2 + $0x12] sm:$0xf] %vm704_vm7, %v693_v28  ;;  %v1256_v28 = vld [vmem:[%s2977_s8 + $0xd0] sm:$0xff] }
 0x12e   : > { %686 = vst.msk [vmem:[#allocation2 + $0x22] sm:$0xf] %vm683_vm6, %v676_v29  ;;  %v1257_v29 = vld [vmem:[%s2977_s8 + $0xd8] sm:$0xff] }
 0x12f   : > { %728 = vst.msk [vmem:[#allocation2 + $0x12] sm:$0xf] %vm727_vm8, %v716_v12  ;;  %v1236_v12 = vld [vmem:[%s2977_s8 + $0x30] sm:$0xff] }
 0x130   : > { %v697_v33 = vpop.permute.xlu1 %696  ;;  %v674_v34 = vpop.permute.xlu0 %673  ;;  %v1978_v18 = vpack.c.bf16 %v1237_v13, %v1236_v12  ;;  %v2010_v13 = vpack.c.bf16 %v1269_v4, %v1268_v3 }
 0x131   : > { %707 = vst.msk [vmem:[#allocation2 + $0x22] sm:$0xf] %vm704_vm7, %v697_v33  ;;  %v1262_v33 = vld [vmem:[%s2977_s8 + $0x100] sm:$0xff] }
 0x132   : > { %685 = vst.msk [vmem:[#allocation2 + $0x1a] sm:$0xf] %vm683_vm6, %v674_v34  ;;  %1979 = vmatpush3.bf16.msra.mxu0 %v1978_v18  ;;  %v1982_v34 = vpack.c.bf16 %v1239_v23, %v1238_v22  ;;  %v1998_v41 = vpack.c.bf16 %v1263_v36, %v1262_v33  ;;  %v1288_v18 = vld [vmem:[%s2977_s8 + $0x1d0] sm:$0xff]  ;;  %v1275_v36 = vld [vmem:[%s2977_s8 + $0x168] sm:$0xff] }
 0x133   : > { %730 = vst.msk [vmem:[#allocation2 + $0x22] sm:$0xf] %vm727_vm8, %v2517_v63 }
 0x134   : > { %v695_v38 = vpop.permute.xlu1 %694  ;;  %v678_v39 = vpop.permute.xlu0 %677  ;;  %1999 = vmatpush3.bf16.msra.mxu1 %v1998_v41  ;;  %v2022_v41 = vpack.c.bf16 %v1275_v36, %v1274_v35 }
 0x135   : > { %706 = vst.msk [vmem:[#allocation2 + $0x1a] sm:$0xf] %vm704_vm7, %v695_v38  ;;  %v1281_v38 = vld [vmem:[%s2977_s8 + $0x198] sm:$0xff] }
 0x136   : > { %687 = vst.msk [vmem:[#allocation2 + $0x2a] sm:$0xf] %vm683_vm6, %v678_v39  ;;  %v2124_v42 = vld [vmem:[#allocation2 + $0xa] ss:$8 sps:$4 sm:$0xff]   ;;  %v1984_v39 = vpack.c.bf16 %v1257_v29, %v1256_v28  ;;  %v1273_v28 = vld [vmem:[%s2977_s8 + $0x158] sm:$0xff]  ;;  %v1290_v29 = vld [vmem:[%s2977_s8 + $0x1e0] sm:$0xff] }
 0x137   : > { %729 = vst.msk [vmem:[#allocation2 + $0x1a] sm:$0xf] %vm727_vm8, %v2499_v46  ;;  %v2125_v44 = vld [vmem:[#allocation2 + $0x9] ss:$8 sps:$4 sm:$0xff]   ;;  %882 = vrot.lane.b32.xlu1 %v2124_v42, %s2290_s21  ;;  %vm1122_vm6 = vcmask 130048  }
 0x138   : > { %v2126_v45 = vld [vmem:[#allocation2 + $0xb] ss:$8 sps:$4 sm:$0xff]   ;;  %v699_v47 = vpop.permute.xlu1 %698  ;;  %860 = vrot.lane.b32.xlu0 %v2125_v44, %s3000_s14 }
 0x139   : > { %v2127_v48 = vld [vmem:[#allocation2 + $0xc] ss:$8 sps:$4 sm:$0xff]   ;;  %708 = vst.msk [vmem:[#allocation2 + $0x2a] sm:$0xf] %vm704_vm7, %v699_v47  ;;  %v2128_v49 = vld [vmem:[#allocation2 + $0x8] ss:$8 sps:$4 sm:$0xff]  }
 0x13a   : > { %731 = vst.msk [vmem:[#allocation2 + $0x2a] sm:$0xf] %vm727_vm8, %v2526_v16  ;;  %v1255_v16 = vld [vmem:[%s2977_s8 + $0xc8] sm:$0xff]  ;;  %v1264_v42 = vld [vmem:[%s2977_s8 + $0x110] sm:$0xff]  ;;  %vm1143_vm7 = vcmask 294016   ;;  %vm1024_vm8 = vcmask 359616  }
 0x13b   : > { %901 = vrot.lane.b32.xlu1 %v2126_v45, %s2293_s30  ;;  %v1980_v21 = vpack.c.bf16 %v1255_v16, %v1254_v15  ;;  %v1258_v45 = vld [vmem:[%s2977_s8 + $0xe0] sm:$0xff]  ;;  %v1259_v47 = vld [vmem:[%s2977_s8 + $0xe8] sm:$0xff] }
 0x13c   : > { %920 = vrot.lane.b32.xlu0 %v2127_v48, %s2999_s23  ;;  %v2000_v48 = vpack.c.bf16 %v1281_v38, %v1280_v37  ;;  %v1270_v15 = vld [vmem:[%s2977_s8 + $0x140] sm:$0xff]  ;;  %v1271_v16 = vld [vmem:[%s2977_s8 + $0x148] sm:$0xff]  ;;  %v1292_v37 = vld [vmem:[%s2977_s8 + $0x1f0] sm:$0xff] }
 0x13d   : > { %1981 = vmatprep.subr.bf16.mxu0 %v1980_v21  ;;  %v2014_v22 = vpack.c.bf16 %v1271_v16, %v1270_v15  ;;  %v1293_v38 = vld [vmem:[%s2977_s8 + $0x1f8] sm:$0xff] }
 0x13e   : > { %v2129_v46 = vld [vmem:[#allocation2 + $0x13] ss:$8 sps:$4 sm:$0xff]   ;;  %1983 = vmatpush3.bf16.msra.mxu0 %v1982_v34  ;;  %2001 = vmatprep.subr.bf16.mxu1 %v2000_v48 }
 0x13f   : > { %999 = vrot.lane.b32.xlu1 %v2129_v46, %s3005_s24  ;;  %v2131_v50 = vld [vmem:[#allocation2 + $0x10] ss:$8 sps:$4 sm:$0xff]   ;;  %v2132_v53 = vld [vmem:[#allocation2 + $0x1c] ss:$8 sps:$4 sm:$0xff]   ;;  %s3034_s24 = smov 56   ;;  %1985 = vmatprep.subr.bf16.mxu0 %v1984_v39 }
 0x140   : > { %841 = vrot.lane.b32.xlu0 %v2128_v49, %s2995_s15  ;;  %v2130_v51 = vld [vmem:[#allocation2 + $0x12] ss:$8 sps:$4 sm:$0xff]   ;;  %s3002_s15 = smov 44   ;;  %v2002_v49 = vpack.c.bf16 %v1265_v43, %v1264_v42  ;;  %v2024_v43 = vpack.c.bf16 %v1293_v38, %v1292_v37  ;;  %v1860_v38 = vld [vmem:[%s2978_s9] ss:$0 sm:$0xff] }
 0x141   : > { %v2133_v52 = vld [vmem:[#allocation2 + $0x20] ss:$8 sps:$4 sm:$0xff]   ;;  %v2136_v57 = vld [vmem:[#allocation2 + $0x14] ss:$8 sps:$4 sm:$0xff]   ;;  %v2164_v19 = vld [vmem:[#allocation2 + $0x10] ss:$8 sps:$4 sm:$0xff]  }
 0x142   : > { %v2135_v54 = vld [vmem:[#allocation2 + $0x1a] ss:$8 sps:$4 sm:$0xff]   ;;  %753 = vst.msk [vmem:[#allocation3 + $0x20] sm:$0xff] %vm644_vm0, %v2164_v19  ;;  %v2148_v44 = vld [vmem:[#allocation2 + $0x2c] ss:$8 sps:$4 sm:$0xff]   ;;  %2003 = vmatpush3.bf16.msra.mxu1 %v2002_v49  ;;  %vm985_vm0 = vcmask 31744  }
 0x143   : > { %939 = vrot.lane.b32.xlu1 %v2131_v50, %s2996_s0  ;;  %v2134_v55 = vld [vmem:[#allocation2 + $0x19] ss:$8 sps:$4 sm:$0xff]   ;;  %s3003_s0 = smov 24   ;;  %v2156_v31 = vld [vmem:[#allocation2 + $0x28] ss:$8 sps:$4 sm:$0xff]  }
 0x144   : > { %977 = vrot.lane.b32.xlu0 %v2130_v51, %s3006_s20  ;;  %v2137_v56 = vld [vmem:[#allocation2 + $0x18] ss:$8 sps:$4 sm:$0xff]   ;;  %v2147_v27 = vld [vmem:[#allocation2 + $0x1c] ss:$8 sps:$4 sm:$0xff]   ;;  %s3036_s20 = smov 52   ;;  %v1283_v51 = vld [vmem:[%s2977_s8 + $0x1a8] sm:$0xff] }
 0x145   : > { %v2139_v58 = vld [vmem:[#allocation2 + $0x11] ss:$8 sps:$4 sm:$0xff]   ;;  %v2140_v62 = vld [vmem:[#allocation2 + $0x21] ss:$8 sps:$4 sm:$0xff]  }
 0x146   : > { %v2138_v59 = vld [vmem:[#allocation2 + $0x11] ss:$8 sps:$4 sm:$0xff]   ;;  %v2143_v0 = vld [vmem:[#allocation2 + $0x22] ss:$8 sps:$4 sm:$0xff]  }
 0x147   : > { %1137 = vrot.lane.b32.xlu1 %v2133_v52, %s3029_s27  ;;  %s3030_s27 = smov 20   ;;  %v2141_v61 = vld [vmem:[#allocation2 + $0x1b] ss:$8 sps:$4 sm:$0xff]   ;;  %v1986_v52 = vpack.c.bf16 %v1241_v40, %v1240_v30  ;;  %v1291_v30 = vld [vmem:[%s2977_s8 + $0x1e8] sm:$0xff] }
 0x148   : > { %1114 = vrot.lane.b32.xlu0 %v2132_v53, %s2998_s17  ;;  %v2142_v63 = vld [vmem:[#allocation2 + $0x19] ss:$8 sps:$4 sm:$0xff]   ;;  %v2020_v34 = vpack.c.bf16 %v1291_v30, %v1290_v29  ;;  %v2163_v49 = vld [vmem:[#allocation2 + $0x2b] ss:$8 sps:$4 sm:$0xff]   ;;  %s3048_s17 = smov 104  }
 0x149   : > { %v2144_v14 = vld [vmem:[#allocation2 + $0x12] ss:$8 sps:$4 sm:$0xff]   ;;  %v2145_v17 = vld [vmem:[#allocation2 + $0x22] ss:$8 sps:$4 sm:$0xff]   ;;  %1987 = vmatpush3.bf16.msra.mxu0 %v1986_v52 }
 0x14a   : > { %v2146_v20 = vld [vmem:[#allocation2 + $0x23] ss:$8 sps:$4 sm:$0xff]   ;;  %v1289_v19 = vld [vmem:[%s2977_s8 + $0x1d8] sm:$0xff] }
 0x14b   : > { %884 = vrot.lane.b32.xlu1 %v2135_v54, %s2290_s21  ;;  %s3031_s21 = smov 36   ;;  %v2149_v46 = vld [vmem:[#allocation2 + $0x1a] ss:$8 sps:$4 sm:$0xff]   ;;  %v1267_v54 = vld [vmem:[%s2977_s8 + $0x128] sm:$0xff]  ;;  %v2016_v23 = vpack.c.bf16 %v1289_v19, %v1288_v18 }
 0x14c   : > { %862 = vrot.lane.b32.xlu0 %v2134_v55, %s3000_s14  ;;  %v1282_v50 = vld [vmem:[%s2977_s8 + $0x1a0] sm:$0xff]  ;;  %v1988_v55 = vpack.c.bf16 %v1259_v47, %v1258_v45  ;;  %v2162_v42 = vld [vmem:[#allocation2 + $0x34] ss:$8 sps:$4 sm:$0xff]   ;;  %s3053_s14 = smov 8  }
 0x14d   : > { %v1266_v53 = vld [vmem:[%s2977_s8 + $0x120] sm:$0xff]  ;;  %v1277_v45 = vld [vmem:[%s2977_s8 + $0x178] sm:$0xff]  ;;  %v2160_v47 = vld [vmem:[#allocation2 + $0x29] ss:$8 sps:$4 sm:$0xff]  }
 0x14e   : > { %1989 = vmatprep.subr.bf16.mxu0 %v1988_v55  ;;  %v2152_v8 = vld [vmem:[#allocation2 + $0x24] ss:$8 sps:$4 sm:$0xff]   ;;  %v2153_v12 = vld [vmem:[#allocation2 + $0x20] ss:$8 sps:$4 sm:$0xff]  }
 0x14f   : > { %1038 = vrot.lane.b32.xlu1 %v2137_v56, %s3002_s15  ;;  %s3035_s15 = smov 4   ;;  %v1242_v56 = vld [vmem:[%s2977_s8 + $0x60] sm:$0xff] }
 0x150   : > { %1018 = vrot.lane.b32.xlu0 %v2136_v57, %s3003_s0  ;;  %s3033_s0 = smov 40   ;;  %v1243_v57 = vld [vmem:[%s2977_s8 + $0x68] sm:$0xff]  ;;  %v2155_v21 = vld [vmem:[#allocation2 + $0x1b] ss:$8 sps:$4 sm:$0xff]  }
 0x151   : > { %v1990_v2 = vpack.c.bf16 %v1243_v57, %v1242_v56  ;;  %v2157_v32 = vld [vmem:[#allocation2 + $0x24] ss:$8 sps:$4 sm:$0xff]   ;;  %v2158_v39 = vld [vmem:[#allocation2 + $0x18] ss:$8 sps:$4 sm:$0xff]  }
 0x152   : > { %v2159_v40 = vld [vmem:[#allocation2 + $0x21] ss:$8 sps:$4 sm:$0xff]  }
 0x153   : > { %766 = vrot.lane.b32.xlu1 %v2139_v58, %s3030_s27  ;;  %s3008_s27 = smov 64   ;;  %v2150_v58 = vld [vmem:[#allocation2 + $0x13] ss:$8 sps:$4 sm:$0xff]   ;;  %1991 = vmatpush3.bf16.msra.mxu0 %v1990_v2 }
 0x154   : > { %958 = vrot.lane.b32.xlu0 %v2138_v59, %s3004_s22  ;;  %s3032_s22 = smov 112   ;;  %v1260_v59 = vld [vmem:[%s2977_s8 + $0xf0] sm:$0xff] }
 0x155   : > { %v1992_v5 = vpack.c.bf16 %v1261_v60, %v1260_v59 }
 0x157   : > { %903 = vrot.lane.b32.xlu1 %v2141_v61, %s2293_s30  ;;  %v2004_v61 = vpack.c.bf16 %v1283_v51, %v1282_v50  ;;  %1993 = vmatprep.subr.bf16.mxu0 %v1992_v5  ;;  %v2789_v50 = vpop.permute.xlu1 %1196 }
 0x158   : > { %1156 = vrot.lane.b32.xlu0 %v2140_v62, %s3031_s21  ;;  %v2151_v62 = vld [vmem:[#allocation2 + $0x23] ss:$8 sps:$4 sm:$0xff]   ;;  %s539_s21 = scalar_lea.vmem %s3052_s4, %s2444_s16  ;;  %s2185_s4 = sshll.u32 %s2307_s3, 4  ;;  %s2186_s4 = int_to_ptr.vmem [resolvable:$false] %s2185_s4 }
 0x159   : > { %2005 = vmatprep.subr.bf16.mxu1 %v2004_v61 }
 0x15b   : > { %1057 = vrot.lane.b32.xlu1 %v2142_v63, %s3008_s27  ;;  %s3037_s27 = smov 124   ;;  %v2006_v63 = vpack.c.bf16 %v1267_v54, %v1266_v53 }
 0x15c   : > { %979 = vrot.lane.b32.xlu0 %v2143_v0, %s3032_s22  ;;  %v1284_v0 = vld [vmem:[%s2977_s8 + $0x1b0] sm:$0xff] }
 0x15d   : > { %v2008_v9 = vpack.c.bf16 %v1285_v1, %v1284_v0  ;;  %2007 = vmatpush3.bf16.msra.mxu1 %v2006_v63 }
 0x15f   : > { %785 = vrot.lane.b32.xlu1 %v2144_v14, %s3033_s0  ;;  %s3038_s0 = smov 60   ;;  %v1994_v14 = vpack.c.bf16 %v1245_v7, %v1244_v6  ;;  %2009 = vmatprep.subr.bf16.mxu1 %v2008_v9 }
 0x160   : > { %1175 = vrot.lane.b32.xlu0 %v2145_v17, %s3034_s24  ;;  %v2012_v17 = vpack.c.bf16 %v1287_v11, %v1286_v10  ;;  %s3047_s24 = smov 84  }
 0x161   : > { %2011 = vmatpush3.bf16.msra.mxu1 %v2010_v13  ;;  %1995 = vmatpush3.bf16.msra.mxu0 %v1994_v14 }
 0x162   : > { %2013 = vmatprep.subr.bf16.mxu1 %v2012_v17 }
 0x163   : > { %1001 = vrot.lane.b32.xlu1 %v2146_v20, %s3035_s15  ;;  %s3041_s15 = smov 72   ;;  %v2154_v20 = vld [vmem:[#allocation2 + $0x14] ss:$8 sps:$4 sm:$0xff]  }
 0x164   : > { %922 = vrot.lane.b32.xlu0 %v2147_v27, %s3036_s20  ;;  %s3009_s20 = smov 84   ;;  %v1272_v27 = vld [vmem:[%s2977_s8 + $0x150] sm:$0xff] }
 0x165   : > { %2015 = vmatpush3.bf16.msra.mxu1 %v2014_v22  ;;  %v2018_v33 = vpack.c.bf16 %v1273_v28, %v1272_v27 }
 0x166   : > { %2017 = vmatprep.subr.bf16.mxu1 %v2016_v23 }
 0x167   : > { %1116 = vrot.lane.b32.xlu1 %v2148_v44, %s3037_s27  ;;  %v1276_v44 = vld [vmem:[%s2977_s8 + $0x170] sm:$0xff]  ;;  %s3045_s27 = smov 92  }
 0x168   : > { %1076 = vrot.lane.b32.xlu0 %v2149_v46, %s3009_s20  ;;  %s3039_s20 = smov 76   ;;  %v2026_v48 = vpack.c.bf16 %v1277_v45, %v1276_v44  ;;  %v2161_v46 = vld [vmem:[#allocation2 + $0x2a] ss:$8 sps:$4 sm:$0xff]  }
 0x169   : > { %2019 = vmatpush3.bf16.msra.mxu1 %v2018_v33 }
 0x16a   : > { %2021 = vmatprep.subr.bf16.mxu1 %v2020_v34 }
 0x16b   : > { %804 = vrot.lane.b32.xlu1 %v2150_v58, %s3038_s0  ;;  %s2306_s0 = smov 96  }
 0x16c   : > { %1194 = vrot.lane.b32.xlu0 %v2151_v62, %s3039_s20  ;;  %s3040_s20 = smov 24  }
 0x16d   : > { %2023 = vmatpush3.bf16.msra.mxu1 %v2022_v41 }
 0x16e   : > { %2025 = vmatprep.subr.bf16.mxu1 %v2024_v43 }
 0x16f   : > { %1020 = vrot.lane.b32.xlu1 %v2152_v8, %s3040_s20  ;;  %s3042_s20 = smov 80  }
 0x170   : > { %941 = vrot.lane.b32.xlu0 %v2153_v12, %s3041_s15  ;;  %s3010_s15 = smov 104  }
 0x171   : > { %2027 = vmatpush3.bf16.msra.mxu1 %v2026_v48 }
 0x173   : > { %823 = vrot.lane.b32.xlu1 %v2154_v20, %s3042_s20  ;;  %s3043_s20 = smov 44  }
 0x174   : > { %1095 = vrot.lane.b32.xlu0 %v2155_v21, %s3010_s15  ;;  %s3046_s15 = smov 64  }
 0x177   : > { %1040 = vrot.lane.b32.xlu1 %v2156_v31, %s3043_s20  ;;  %s3044_s20 = smov 100  }
 0x178   : > { %1213 = vrot.lane.b32.xlu0 %v2157_v32, %s2306_s0 }
 0x17b   : > { %843 = vrot.lane.b32.xlu1 %v2158_v39, %s3044_s20 }
 0x17c   : > { %960 = vrot.lane.b32.xlu0 %v2159_v40, %s3045_s27 }
 0x17f   : > { %1215 = vrot.lane.b32.xlu1 %v2162_v42, %s2306_s0 }
 0x180   : > { %1059 = vrot.lane.b32.xlu0 %v2160_v47, %s3046_s15 }
 0x184   : > { %1078 = vrot.lane.b32.xlu0 %v2161_v46, %s3047_s24  ;;  %s3054_s24 = smov 120  }
 0x188   : > { %1097 = vrot.lane.b32.xlu0 %v2163_v49, %s3048_s17 }
 0x1a9   : > { %v883_v51 = vpop.permute.xlu1 %882 }
 0x1aa   : > { %v861_v52 = vpop.permute.xlu0 %860 }
 0x1ab   : > { %869 = vst.msk [vmem:[#allocation3 + $0x8] sm:$0xff] %vm868_vm9, %v861_v52 }
 0x1ac   : > { %889 = vst.msk [vmem:[#allocation3 + $0x8] sm:$0xff] %vm888_vm10, %v883_v51 }
 0x1ad   : > { %v902_v53 = vpop.permute.xlu1 %901 }
 0x1ae   : > { %908 = vst.msk [vmem:[#allocation3 + $0x8] sm:$0xff] %vm907_vm11, %v902_v53  ;;  %v921_v54 = vpop.permute.xlu0 %920 }
 0x1af   : > { %927 = vst.msk [vmem:[#allocation3 + $0x8] sm:$0xff] %vm926_vm12, %v921_v54 }
 0x1b1   : > { %v1000_v55 = vpop.permute.xlu1 %999 }
 0x1b2   : > { %v842_v56 = vpop.permute.xlu0 %841 }
 0x1b3   : > { %848 = vst.msk [vmem:[#allocation3] sm:$0xff] %vm3013_vm13, %v842_v56  ;;  %vm964_vm13 = vcmask 917216  }
 0x1b4   : > { %867 = vst.msk [vmem:[#allocation3] sm:$0xff] %vm3012_vm14, %v861_v52  ;;  %vm1044_vm14 = vcmask 523616   ;;  %v1465_v52 = vld [vmem:[%s539_s21] sm:$0xff] }
 0x1b5   : > { %v940_v57 = vpop.permute.xlu1 %939 }
 0x1b6   : > { %946 = vst.msk [vmem:[#allocation3 + $0x8] sm:$0xff] %vm945_vm15, %v940_v57  ;;  %v978_v58 = vpop.permute.xlu0 %977 }
 0x1b7   : > { %986 = vst.msk [vmem:[#allocation3 + $0x10] sm:$0xff] %vm985_vm0, %v978_v58 }
 0x1b8   : > { %1006 = vst.msk [vmem:[#allocation3 + $0x10] sm:$0xff] %vm1005_vm1, %v1000_v55  ;;  %v1466_v55 = vld [vmem:[%s539_s21 + $0x8] sm:$0xff]  ;;  %s1878_s21 = sshll.u32 %s2401_s29, 8  ;;  %s2187_s29 = scalar_lea.vmem %s2186_s4, 512 }
 0x1b9   : > { %v1138_v59 = vpop.permute.xlu1 %1137  ;;  %s2888_s2 = scalar_lea.hbm %s2981_s12, %s1878_s21 }
 0x1ba   : > { %v2800_v60 = vpop.permute.xlu0 %1114 }
 0x1bb   : > { %1123 = vst.msk [vmem:[#allocation3 + $0x18] sm:$0xff] %vm1122_vm6, %v2800_v60  ;;  %v1222_v8 = vld [vmem:[#allocation3] sm:$0xff] }
 0x1bc   : > { %1144 = vst.msk [vmem:[#allocation3 + $0x18] sm:$0xff] %vm1143_vm7, %v1138_v59 }
 0x1bd   : > { %v885_v61 = vpop.permute.xlu1 %884 }
 0x1be   : > { %v2805_v62 = vpop.permute.xlu0 %862 }
 0x1bf   : > { %871 = vst.msk [vmem:[#allocation3 + $0x28] sm:$0xff] %vm868_vm9, %v2805_v62  ;;  %vm1162_vm9 = vcmask 458016  }
 0x1c0   : > { %890 = vst.msk [vmem:[#allocation3 + $0x28] sm:$0xff] %vm888_vm10, %v885_v61  ;;  %vm1063_vm10 = vcmask 687616  }
 0x1c1   : > { %v1039_v63 = vpop.permute.xlu1 %1038 }
 0x1c2   : > { %v1019_v0 = vpop.permute.xlu0 %1018 }
 0x1c3   : > { %1025 = vst.msk [vmem:[#allocation3 + $0x10] sm:$0xff] %vm1024_vm8, %v1019_v0 }
 0x1c4   : > { %1045 = vst.msk [vmem:[#allocation3 + $0x10] sm:$0xff] %vm1044_vm14, %v1039_v63 }
 0x1c5   : > { %v767_v1 = vpop.permute.xlu1 %766 }
 0x1c6   : > { %772 = vst.msk [vmem:[#allocation3 + $0x20] sm:$0xff] %vm770_vm2, %v767_v1  ;;  %v959_v2 = vpop.permute.xlu0 %958  ;;  %vm1181_vm2 = vcmask 622016  }
 0x1c7   : > { %965 = vst.msk [vmem:[#allocation3 + $0x8] sm:$0xff] %vm964_vm13, %v959_v2 }
 0x1c8   : > { %984 = vst.msk [vmem:[#allocation3 + $0x8] sm:$0xff] %vm983_vm5, %v978_v58 }
 0x1c9   : > { %v904_v3 = vpop.permute.xlu1 %903 }
 0x1ca   : > { %909 = vst.msk [vmem:[#allocation3 + $0x28] sm:$0xff] %vm907_vm11, %v904_v3  ;;  %v1157_v4 = vpop.permute.xlu0 %1156  ;;  %vm1082_vm11 = vcmask 851616  }
 0x1cb   : > { %1163 = vst.msk [vmem:[#allocation3 + $0x18] sm:$0xff] %vm1162_vm9, %v1157_v4 }
 0x1cd   : > { %v1058_v5 = vpop.permute.xlu1 %1057 }
 0x1ce   : > { %1064 = vst.msk [vmem:[#allocation3 + $0x10] sm:$0xff] %vm1063_vm10, %v1058_v5  ;;  %v980_v6 = vpop.permute.xlu0 %979 }
 0x1cf   : > { %988 = vst.msk [vmem:[#allocation3 + $0x30] sm:$0xff] %vm985_vm0, %v980_v6  ;;  %v1223_v7 = vld [vmem:[#allocation3 + $0x8] sm:$0xff]  ;;  %vm1120_vm0 = vcmask 1048544  }
 0x1d0   : > { %1365 = vmatprep.mubr.f32.mxu0 %v1223_v7 }
 0x1d1   : > { %1366 = vmatmul.mubr.f32.vlgmr.msra.gmra.mrb[0].mxu0 %v1222_v8  ;;  %v786_v9 = vpop.permute.xlu1 %785 }
 0x1d2   : > { %791 = vst.msk [vmem:[#allocation3 + $0x20] sm:$0xff] %vm789_vm3, %v786_v9  ;;  %v1176_v10 = vpop.permute.xlu0 %1175  ;;  %vm1200_vm3 = vcmask 786016  }
 0x1d3   : > { %1182 = vst.msk [vmem:[#allocation3 + $0x18] sm:$0xff] %vm1181_vm2, %v1176_v10 }
 0x1d5   : > { %v1002_v11 = vpop.permute.xlu1 %1001 }
 0x1d6   : > { %1007 = vst.msk [vmem:[#allocation3 + $0x30] sm:$0xff] %vm1005_vm1, %v1002_v11  ;;  %v923_v12 = vpop.permute.xlu0 %922  ;;  %vm3049_vm1 = vcmask 818816  }
 0x1d7   : > { %928 = vst.msk [vmem:[#allocation3 + $0x28] sm:$0xff] %vm926_vm12, %v923_v12  ;;  %vm1101_vm12 = vcmask 1015616  }
 0x1d9   : > { %v1117_v13 = vpop.permute.xlu1 %1116 }
 0x1da   : > { %1125 = vst.msk [vmem:[#allocation3 + $0x38] sm:$0xff] %vm1122_vm6, %v1117_v13  ;;  %v1077_v14 = vpop.permute.xlu0 %1076  ;;  %vm3050_vm6 = vcmask 982816  }
 0x1db   : > { %1145 = vst.msk [vmem:[#allocation3 + $0x38] sm:$0xff] %vm1143_vm7, %v2537_v24 }
 0x1dc   : > { %1083 = vst.msk [vmem:[#allocation3 + $0x10] sm:$0xff] %vm1082_vm11, %v1077_v14  ;;  %v1530_v14 = vld [vmem:[%s2979_s10] sm:$0xff] }
 0x1dd   : > { %1164 = vst.msk [vmem:[#allocation3 + $0x38] sm:$0xff] %vm1162_vm9, %v2539_v25  ;;  %v805_v15 = vpop.permute.xlu1 %804  ;;  %1959 = vmatprep.subr.mxu0 %v1530_v14 }
 0x1de   : > { %1183 = vst.msk [vmem:[#allocation3 + $0x38] sm:$0xff] %vm1181_vm2, %v2541_v26  ;;  %v1195_v16 = vpop.permute.xlu0 %1194  ;;  %1960 = vmatpush3.msra.mxu0 %v1530_v14 }
 0x1df   : > { %810 = vst.msk [vmem:[#allocation3 + $0x20] sm:$0xff] %vm808_vm4, %v805_v15  ;;  %vm1219_vm4 = vcmask 950016  }
 0x1e0   : > { %1202 = vst.msk [vmem:[#allocation3 + $0x38] sm:$0xff] %vm1200_vm3, %v2789_v50  ;;  %1201 = vst.msk [vmem:[#allocation3 + $0x18] sm:$0xff] %vm1200_vm3, %v1195_v16 }
 0x1e1   : > { %v1021_v17 = vpop.permute.xlu1 %1020 }
 0x1e2   : > { %1026 = vst.msk [vmem:[#allocation3 + $0x30] sm:$0xff] %vm1024_vm8, %v1021_v17  ;;  %v942_v24 = vpop.permute.xlu0 %941 }
 0x1e3   : > { %947 = vst.msk [vmem:[#allocation3 + $0x28] sm:$0xff] %vm945_vm15, %v942_v24  ;;  %vm3051_vm15 = vcmask 1048512  }
 0x1e5   : > { %v824_v18 = vpop.permute.xlu1 %823 }
 0x1e6   : > { %829 = vst.msk [vmem:[#allocation3 + $0x20] sm:$0xff] %vm3049_vm1, %v824_v18  ;;  %v1096_v25 = vpop.permute.xlu0 %1095 }
 0x1e7   : > { %1102 = vst.msk [vmem:[#allocation3 + $0x10] sm:$0xff] %vm1101_vm12, %v1096_v25 }
 0x1e8   : > { %1121 = vst.msk [vmem:[#allocation3 + $0x10] sm:$0xff] %vm1120_vm0, %v2800_v60 }
 0x1e9   : > { %v1041_v26 = vpop.permute.xlu1 %1040 }
 0x1ea   : > { %1046 = vst.msk [vmem:[#allocation3 + $0x30] sm:$0xff] %vm1044_vm14, %v1041_v26  ;;  %v1214_v19 = vpop.permute.xlu0 %1213 }
 0x1eb   : > { %1220 = vst.msk [vmem:[#allocation3 + $0x18] sm:$0xff] %vm1219_vm4, %v1214_v19 }
 0x1ed   : > { %v844_v20 = vpop.permute.xlu1 %843 }
 0x1ee   : > { %849 = vst.msk [vmem:[#allocation3 + $0x20] sm:$0xff] %vm3050_vm6, %v844_v20  ;;  %v961_v21 = vpop.permute.xlu0 %960 }
 0x1ef   : > { %870 = vst.msk [vmem:[#allocation3 + $0x20] sm:$0xff] %vm3051_vm15, %v2805_v62  ;;  %v1224_v28 = vld [vmem:[#allocation3 + $0x10] sm:$0xff] }
 0x1f0   : > { %966 = vst.msk [vmem:[#allocation3 + $0x28] sm:$0xff] %vm964_vm13, %v961_v21 }
 0x1f1   : > { %987 = vst.msk [vmem:[#allocation3 + $0x28] sm:$0xff] %vm983_vm5, %v980_v6  ;;  %v1216_v22 = vpop.permute.xlu1 %1215  ;;  %vm1517_vm5 = vcmask 64512  }
 0x1f2   : > { %v1060_v23 = vpop.permute.xlu0 %1059  ;;  %v1225_v27 = vld [vmem:[#allocation3 + $0x18] sm:$0xff]  ;;  %1221 = vst.msk [vmem:[#allocation3 + $0x38] sm:$0xff] %vm1219_vm4, %v1216_v22 }
 0x1f3   : > { %1065 = vst.msk [vmem:[#allocation3 + $0x30] sm:$0xff] %vm1063_vm10, %v1060_v23  ;;  %1440 = vmatprep.mubr.f32.mxu1 %v1225_v27 }
 0x1f4   : > { %1441 = vmatmul.mubr.f32.vlgmr.msra.gmra.mrb[0].mxu1 %v1224_v28 }
 0x1f6   : > { %v1079_v29 = vpop.permute.xlu0 %1078  ;;  %v1226_v30 = vld [vmem:[#allocation3 + $0x20] sm:$0xff] }
 0x1f7   : > { %1084 = vst.msk [vmem:[#allocation3 + $0x30] sm:$0xff] %vm1082_vm11, %v1079_v29 }
 0x1f8   : > { %v1227_v31 = vld [vmem:[#allocation3 + $0x28] sm:$0xff] }
 0x1f9   : > { %1370 = vmatprep.mubr.f32.mxu0 %v1227_v31  ;;  %v1229_v32 = vld [vmem:[#allocation3 + $0x38] sm:$0xff] }
 0x1fa   : > { %1371 = vmatmul.mubr.f32.gmra.mrb[2].mxu0 %v1226_v30  ;;  %v1098_v33 = vpop.permute.xlu0 %1097  ;;  %1445 = vmatprep.mubr.f32.mxu1 %v1229_v32 }
 0x1fb   : > { %1103 = vst.msk [vmem:[#allocation3 + $0x30] sm:$0xff] %vm1101_vm12, %v1098_v33 }
 0x1fc   : > { %1124 = vst.msk [vmem:[#allocation3 + $0x30] sm:$0xff] %vm1120_vm0, %v1117_v13 }
 0x203   : > { %v1228_v34 = vld [vmem:[#allocation3 + $0x30] sm:$0xff] }
 0x204   : > { %1446 = vmatmul.mubr.f32.gmra.mrb[2].mxu1 %v1228_v34 }
 0x2a4   : > { %v1912_v35 = vpop.f32.mrb[0].mxu0 }
 0x2a5   : > { %v1913_v36 = vpop.f32.mrb[1].mxu0 }
 0x2a6   : > { %v1914_v37 = vadd.f32 %v1913_v36, %v1912_v35 }
 0x2a8   : > { %v1368_v41 = vadd.f32 %v1914_v37, %v1860_v38 }
 0x2c7   : > { %v1950_v39 = vpop.f32.mrb[0].mxu1 }
 0x2c8   : > { %v1951_v40 = vpop.f32.mrb[1].mxu1 }
 0x2c9   : > { %v1952_v42 = vadd.f32 %v1951_v40, %v1950_v39 }
 0x2cb   : > { %v1443_v43 = vadd.f32 %v1952_v42, %v1368_v41 }
 0x2cd   : > { %v1915_v44 = vpop.f32.mrb[2].mxu0  ;;  %2165 = vtanh.f32 %v1443_v43  ;;  %v1861_v56 = vmul.f32 -1.442695, %v1443_v43 }
 0x2ce   : > { %v1916_v45 = vpop.f32.mrb[3].mxu0 }
 0x2cf   : > { %v1917_v47 = vadd.f32 %v1916_v45, %v1915_v44 }
 0x2d1   : > { %v1373_v50 = vadd.f32 %v1917_v47, %v1860_v38 }
 0x2d7   : > { %v2166_v48 = vpop.eup %2165  ;;  %v1953_v46 = vpop.f32.mrb[2].mxu1 }
 0x2d8   : > { %1479 = vrot.lane.b32.xlu0 %v2166_v48, %s3048_s17  ;;  %v1954_v49 = vpop.f32.mrb[3].mxu1 }
 0x2d9   : > { %v1955_v51 = vadd.f32 %v1954_v49, %v1953_v46 }
 0x2db   : > { %v1448_v53 = vadd.f32 %v1955_v51, %v1373_v50 }
 0x2dc   : > { %1469 = vrot.lane.b32.xlu0 %v1465_v52, %s3053_s14 }
 0x2dd   : > { %2167 = vtanh.f32 %v1448_v53  ;;  %v1862_v58 = vmul.f32 -1.442695, %v1448_v53 }
 0x2de   : > { %2169 = vpow2.f32 %v1861_v56 }
 0x2df   : > { %2171 = vpow2.f32 %v1862_v58 }
 0x2e7   : > { %v2168_v54 = vpop.eup %2167 }
 0x2e8   : > { %1481 = vrot.lane.b32.xlu1 %v2168_v54, %s3048_s17  ;;  %v2170_v57 = vpop.eup %2169  ;;  %s2872_s17 = sand.u32 1, %s2267_s26  }
 0x2e9   : > { %v1457_v59 = vadd.f32 1.0, %v2170_v57  ;;  %v2172_v60 = vpop.eup %2171  ;;  %s1834_s0 = sshll.u32 %s2872_s17, 4 }
 0x2ea   : > { %v1458_v0 = vadd.f32 1.0, %v2172_v60  ;;  %s504_s20 = scalar_lea.vmem [#allocation4], %s1834_s0  ;;  %s511_s23 = scalar_lea.vmem [#allocation6], %s1834_s0 }
 0x2eb   : > { %2173 = vrcp.f32 %v1457_v59  ;;  %s1654_s30 = sshll.u32 %s511_s23, 4  ;;  %s2877_s30 = int_to_ptr.vmem [resolvable:$true] %s1654_s30 }
 0x2ec   : > { %1471 = vrot.lane.b32.xlu1 %v1466_v55, %s3053_s14  ;;  %2175 = vrcp.f32 %v1458_v0 }
 0x2f5   : > { %v2174_v61 = vpop.eup %2173 }
 0x2f6   : > { %v2176_v1 = vpop.eup %2175 }
 0x34a   : > { %v1480_v62 = vpop.permute.xlu0 %1479 }
 0x34b   : > { %v1485_v63 = vmul.f32 %v2174_v61, %v1480_v62 }
 0x34d   : > { %1489 = vrot.lane.b32.xlu0 %v1485_v63, %s3053_s14 }
 0x34e   : > { %v1470_v4 = vpop.permute.xlu0 %1469 }
 0x34f   : > { %v1475_v5 = vmul.f32 %v2174_v61, %v1470_v4 }
 0x35a   : > { %v1482_v2 = vpop.permute.xlu1 %1481 }
 0x35b   : > { %v1486_v3 = vmul.f32 %v2176_v1, %v1482_v2 }
 0x35d   : > { %1491 = vrot.lane.b32.xlu1 %v1486_v3, %s3053_s14 }
 0x35e   : > { %v1472_v8 = vpop.permute.xlu1 %1471 }
 0x35f   : > { %v1476_v10 = vmul.f32 %v2176_v1, %v1472_v8 }
 0x3bf   : > { %v1490_v6 = vpop.permute.xlu0 %1489 }
 0x3c0   : > { %v1495_v7 = vadd.f32 %v1490_v6, %v1475_v5 }
 0x3c2   : > { %2177 = vtanh.f32 %v1495_v7 }
 0x3cc   : > { %v2178_v9 = vpop.eup %2177 }
 0x3cd   : > { %1501 = vrot.lane.b32.xlu0 %v2178_v9, %s3053_s14 }
 0x3cf   : > { %v1492_v11 = vpop.permute.xlu1 %1491 }
 0x3d0   : > { %v1496_v12 = vadd.f32 %v1492_v11, %v1476_v10 }
 0x3d2   : > { %2179 = vtanh.f32 %v1496_v12 }
 0x3dc   : > { %v2180_v13 = vpop.eup %2179 }
 0x3dd   : > { %1503 = vrot.lane.b32.xlu1 %v2180_v13, %s3053_s14 }
 0x43f   : > { %v1502_v15 = vpop.permute.xlu0 %1501 }
 0x440   : > { %v1507_v16 = vmul.f32 %v2174_v61, %v1502_v15 }
 0x442   : > { %1511 = vrot.lane.b32.xlu0 %v1507_v16, %s3032_s22 }
 0x446   : > { %1522 = vrot.lane.b32.xlu0 %v1495_v7, %s3054_s24 }
 0x44f   : > { %v1504_v17 = vpop.permute.xlu1 %1503 }
 0x450   : > { %v1508_v24 = vmul.f32 %v2176_v1, %v1504_v17 }
 0x452   : > { %1513 = vrot.lane.b32.xlu1 %v1508_v24, %s3032_s22  ;;  %s1638_s22 = sshll.u32 %s504_s20, 4  ;;  %s2875_s22 = int_to_ptr.vmem [resolvable:$true] %s1638_s22 }
 0x453   : > { %p2188_p0 = scmp.lt.s32.totalorder %s2875_s22, %s2186_s4 }
 0x456   : > { %1524 = vrot.lane.b32.xlu1 %v1496_v12, %s3054_s24  ;;  %s2883_s24 = scalar_lea.hbm %s2980_s11, %s1878_s21 }
 0x4b4   : > { %v1512_v18 = vpop.permute.xlu0 %1511 }
 0x4b5   : > { %1518 = vst.msk [vmem:[%s504_s20] sm:$0xff] %vm1517_vm5, %v1512_v18  ;;  %1961 = vmatprep.mubr.msk.f32.mxu0 %vm1517_vm5, %v1512_v18 }
 0x4b8   : > { %v1523_v25 = vpop.permute.xlu0 %1522 }
 0x4b9   : > { %1528 = vst.msk [vmem:[%s511_s23] sm:$0xff] %vm1517_vm5, %v1523_v25 }
 0x4c4   : > { %v1514_v26 = vpop.permute.xlu1 %1513 }
 0x4c5   : > { %1519 = vst.msk [vmem:[%s504_s20 + $0x8] sm:$0xff] %vm1517_vm5, %v1514_v26  ;;  %1962 = vmatmul.mubr.msk.f32.vlgmr.msra.gmra.mrb[4].mxu0 %vm1517_vm5, %v1514_v26  ;;  %s1615_s20 = scalar_lea.sflag [#allocation5], %s2872_s17 }
 0x4c8   : > { %v1525_v19 = vpop.permute.xlu1 %1524 }
 0x4c9   : > { %1529 = vst.msk [vmem:[%s511_s23 + $0x8] sm:$0xff] %vm1517_vm5, %v1525_v19  ;;  %s2181_s23 = scalar_lea.vmem %s2875_s22, 256 }
 0x4ca   : > { %p2182_p11 = scmp.ne.s32.totalorder %s2875_s22, %s2181_s23  ;;  %p2189_p1 = scmp.lt.s32.totalorder %s2187_s29, %s2181_s23 }
 0x4cc   : > { %p2183_p12 = pnand %p2182_p11, %p2418_p5  ;;  %p2190_p2 = por %p2189_p1, %p2188_p0 }
 0x4ce   : > { %p2184_p13 = pneg %p2183_p12 }
 0x4d0   : > { %p2191_p3 = pnand %p2190_p2, %p2184_p13 }
 0x4d2   : > { %2194 = shalt.err (!%p2191_p3)
}
 0x4d3   : > { %s2195_s1 = scalar_lea.hbm %s2883_s24, 256  ;;  %s2199_s3 = scalar_lea.hbm %s2980_s11, 512 }
 0x4d4   : > { %p2196_p4 = scmp.ne.s32.totalorder %s2883_s24, %s2195_s1  ;;  %p2200_p9 = scmp.lt.u32.totalorder %s2883_s24, %s2980_s11 }
 0x4d5   : > { %p2201_p10 = scmp.lt.u32.totalorder %s2199_s3, %s2195_s1  ;;  %p2203_p12 = scmp.lt.u32.totalorder %s2195_s1, %s2883_s24 }
 0x4d6   : > { %p2197_p7 = pnand %p2196_p4, %p2418_p5 }
 0x4d7   : > { %p2202_p11 = por %p2201_p10, %p2200_p9 }
 0x4d8   : > { %p2198_p8 = pneg %p2197_p7 }
 0x4d9   : > { %p2204_p13 = por %p2203_p12, %p2202_p11 }
 0x4db   : > { %p2205_p0 = pnand %p2204_p13, %p2198_p8 }
 0x4dd   : > { %2208 = shalt.err (!%p2205_p0)
}
 0x4de   : > { %s2308_s0 = smov 128   ;;  %s1620_s23 = scalar_lea.sflag [#allocation7], %s2872_s17 }
 0x4df   : > { %2028 = dma.vmem_to_hbm [thread:$0]  (%p2418_p5), %s2875_s22, 256, %s2883_s24, %s1615_s20, %s2308_s0, %s2308_s0, %s3053_s14  }
 0x4e0   : > { %s2209_s29 = scalar_lea.vmem %s2877_s30, 256  ;;  %s2309_s1 = smov [#allocation6]  }
 0x4e1   : > { %p2210_p1 = scmp.ne.s32.totalorder %s2877_s30, %s2209_s29  ;;  %s2213_s21 = sshll.u32 %s2309_s1, 4  ;;  %s2214_s21 = int_to_ptr.vmem [resolvable:$false] %s2213_s21 }
 0x4e2   : > { %s2215_s27 = scalar_lea.vmem %s2214_s21, 512  ;;  %p2216_p4 = scmp.lt.s32.totalorder %s2877_s30, %s2214_s21 }
 0x4e3   : > { %p2211_p2 = pnand %p2210_p1, %p2418_p5  ;;  %p2217_p7 = scmp.lt.s32.totalorder %s2215_s27, %s2209_s29 }
 0x4e5   : > { %p2212_p3 = pneg %p2211_p2  ;;  %p2218_p8 = por %p2217_p7, %p2216_p4 }
 0x4e7   : > { %p2219_p9 = pnand %p2218_p8, %p2212_p3 }
 0x4e9   : > { %2222 = shalt.err (!%p2219_p9)
}
 0x4ea   : > { %s2223_s22 = scalar_lea.hbm %s2888_s2, 256  ;;  %s2227_s3 = scalar_lea.hbm %s2981_s12, 512 }
 0x4eb   : > { %p2224_p10 = scmp.ne.s32.totalorder %s2888_s2, %s2223_s22  ;;  %p2228_p13 = scmp.lt.u32.totalorder %s2888_s2, %s2981_s12 }
 0x4ec   : > { %p2229_p0 = scmp.lt.u32.totalorder %s2227_s3, %s2223_s22  ;;  %p2231_p2 = scmp.lt.u32.totalorder %s2223_s22, %s2888_s2 }
 0x4ed   : > { %p2225_p11 = pnand %p2224_p10, %p2418_p5 }
 0x4ee   : > { %p2230_p1 = por %p2229_p0, %p2228_p13 }
 0x4ef   : > { %p2226_p12 = pneg %p2225_p11 }
 0x4f0   : > { %p2232_p3 = por %p2231_p2, %p2230_p1 }
 0x4f2   : > { %p2233_p4 = pnand %p2232_p3, %p2226_p12 }
 0x4f4   : > { %2236 = shalt.err (!%p2233_p4)
}
 0x4f5   : > { %2029 = dma.vmem_to_hbm [thread:$0]  (%p2418_p5), %s2877_s30, 256, %s2888_s2, %s1620_s23, %s2308_s0, %s2308_s0, %s3053_s14  }
 0x4f6   : > { %s544_s21 = scalar_lea.vmem %s2974_s5, %s2444_s16  ;;  %s549_s18 = scalar_lea.vmem %s2982_s13, %s2444_s16 }
 0x4f7   : > { %v1532_v20 = vld [vmem:[%s544_s21 + $0x8] sm:$0xff]  ;;  %v1531_v21 = vld [vmem:[%s544_s21] sm:$0xff] }
 0x598   : > { %v1963_v22 = vpop.f32.mrb[4].mxu0 }
 0x599   : > { %v1609_v23 = vadd.f32 %v1963_v22, %v1532_v20  ;;  %v1603_v27 = vpop.f32.mrb[5].mxu0 }
 0x59a   : > { %v1604_v28 = vadd.f32 %v1603_v27, %v1531_v21 }
 0x59b   : > { %1613 = vst [vmem:[%s549_s18 + $0x8] sm:$0xff] %v1609_v23 }
 0x59c   : > { %1612 = vst [vmem:[%s549_s18] sm:$0xff] %v1604_v28 }
 0x59d PF: > { %p2039_p5 = scmp.ge.s32.totalorder %s2275_s28, 2  ;;  %s1672_s2 = sand.u32 1, %s2263_s25  }
 0x59e   : > { %s1673_s14 = scalar_lea.sflag [#allocation5], %s1672_s2 }
 0x59f   : > { %p2033_p7 = pnand %p2039_p5, %p2422_p6 }
 0x5a1   : > { %2254 = dma.done.wait (!%p2033_p7), %s1673_s14, 256  }
 0x5a2   : > { %2256 = vsyncadd (!%p2033_p7), %s1673_s14, 4294967040  ;;  %s1682_s17 = scalar_lea.sflag [#allocation7], %s1672_s2 }
 0x5a3   : > { %2258 = dma.done.wait (!%p2033_p7), %s1682_s17, 256  }
 0x5a4   : > { %2260 = vsyncadd (!%p2033_p7), %s1682_s17, 4294967040  ;;  %s3055_s28 = sld [smem:[#allocation11_spill]]  ;;  %s3056_s16 = sld [smem:[#allocation10_spill]] }
 0x5a5   : > { %s3057_s27 = sld [smem:[#allocation12_spill]]  ;;  %s3058_s25 = smov %s2267_s26 }
 0x5aa   : > { %p27_p8 = scmp.ge.s32.totalorder %s3055_s28, 4   ;;  %s3059_s26 = smov %s3056_s16 }
 0x5ac   :  { %29 = sbr.rel (!%p27_p8) target bundleno = 11 (0xb), region = 153 }
 0x5b3   :  { %1695 = vsyncpa [#allocation5], 1 }
 0x5b4   :  { %1697 = vsyncpa [#allocation5 + $0x1], 1 }
 0x5b5   :  { %1698 = vsyncpa [#allocation7], 1 }
 0x5b6   :  { %1700 = vsyncpa [#allocation7 + $0x1], 1 }

</bundles_post_ra>
